<compile_context>
chip_gen: v7x
topology: tpu7x:2x2x1
jax: 0.10.0
libtpu: 0.0.40
codegen_flags: <defaults>
</compile_context>

<pallas_src>
import jax
import jax.numpy as jnp
from jax import lax
from jax.experimental import pallas as pl
from jax.experimental.pallas import tpu as pltpu

C1 = 16        # conv1 out channels
C2 = 32        # conv2 out channels
H1 = 64        # fc1 hidden
H1_PAD = 128   # fc1 hidden padded to full lane width (per review: leave N at 128)
FC2_ROWS = 8   # fc2 weight row padded to a full sublane tile (row 0 is real)


def cnn_kernel(x_ref, w1_ref, b1_ref, w2_ref, b2_ref,
               fc1w_ref, fc1b_ref, fc2w_ref, fc2b_ref, out_ref):
    M = x_ref.shape[0]            # L * TILE_B (time-major rows: row = t*TB + b)
    TB = out_ref.shape[-1]        # TILE_B
    L = M // TB
    mm_dtype = w2_ref.dtype       # matmul operand dtype (bf16 by default)

    x0 = x_ref[...]                                           # (M, 1) f32

    # Per-sample sequence-boundary masks, shared by the conv1 and conv2 shifts.
    row = lax.broadcasted_iota(jnp.int32, (M, 1), 0)
    first = row < TB              # t == 0
    last = row >= M - TB          # t == L - 1

    # x[t-1] / x[t+1] with zero padding at the sequence edges.
    x_m1 = jnp.where(first, 0.0, pltpu.roll(x0, shift=TB, axis=0))
    x_p1 = jnp.where(last, 0.0, pltpu.roll(x0, shift=M - TB, axis=0))

    # conv1 (1 -> 16, k=3, pad=1) + ReLU  ->  (M, 16)   [VPU, f32]
    h1 = (x_m1 * w1_ref[0:1, :] + x0 * w1_ref[1:2, :] + x_p1 * w1_ref[2:3, :]
          + b1_ref[...])
    h1 = jnp.maximum(h1, 0.0)

    h1_m1 = jnp.where(first, 0.0, pltpu.roll(h1, shift=TB, axis=0))
    h1_p1 = jnp.where(last, 0.0, pltpu.roll(h1, shift=M - TB, axis=0))

    # conv2 (16 -> 32, k=3, pad=1) + ReLU fused into ONE (M,48)x(48,32) matmul.
    h1cat = jnp.concatenate([h1_m1, h1, h1_p1], axis=-1).astype(mm_dtype)
    h2 = (jnp.dot(h1cat, w2_ref[...], preferred_element_type=jnp.float32)
          + b2_ref[...])
    h2 = jnp.maximum(h2, 0.0).astype(mm_dtype)                # (M, 32)

    # Flatten to (TILE_B, L*32), column index t*32 + c (matches the fc1 weight
    # permutation done in pack_for_kernel).  Each time slice is a contiguous
    # (TB, 32) sublane block of h2; a single lane-concat replaces the old scratch
    # plus 16 masked 32-lane stores.
    flat = jnp.concatenate([h2[t * TB:(t + 1) * TB, :] for t in range(L)],
                           axis=-1)                           # (TB, L*32)

    # fc1 (+ ReLU): one (TILE_B, L*32) x (L*32, 128) matmul; lanes 64.. stay zero.
    h3 = (jnp.dot(flat, fc1w_ref[...], preferred_element_type=jnp.float32)
          + fc1b_ref[...])
    h3 = jnp.maximum(h3, 0.0)                                 # (TB, 128) f32

    # fc2 -> one lane-dense (1, TILE_B) row per grid step (no 128x output padding).
    # fc2w is (8, 128) with only row 0 real; rows 1..7 are zero.
    out8 = jnp.dot(fc2w_ref[...], h3.T, preferred_element_type=jnp.float32)
    out_ref[0] = out8[0:1, :] + fc2b_ref[...]                 # (1, TB)


def cnn_forward_pallas(x, kparams, tile_b=256):
    B, L = x.shape
    (w1t, b1, w2cat, b2, fc1w, fc1b, fc2w, fc2b) = kparams

    # Clamp the batch tile for small batches so a tiny batch is not padded to 256;
    # keep it a multiple of 16 (bf16 sublane packing).  For v7x, callers with large
    # B should keep tile_b such that G = cdiv(B, tile_b) >= 2 to use both cores.
    tb = min(int(tile_b), ((B + 15) // 16) * 16)
    tb = max(16, ((tb + 15) // 16) * 16)
    G = pl.cdiv(B, tb)
    B_pad = G * tb

    x = x.astype(jnp.float32)
    if B_pad != B:
        x = jnp.concatenate([x, jnp.zeros((B_pad - B, L), jnp.float32)], axis=0)

    # Rows ordered (tile, t, b): per grid step the kernel sees (L*tb, 1) with
    # row = t*tb + b, so per-t slices are contiguous sublane blocks.
    x_k = x.reshape(G, tb, L).transpose(0, 2, 1).reshape(G * L * tb, 1)

    def full(arr):
        nd = arr.ndim
        return pl.BlockSpec(arr.shape, lambda i: (0,) * nd)

    grid_spec = pltpu.PrefetchScalarGridSpec(
        num_scalar_prefetch=0,
        grid=(G,),
        in_specs=[
            pl.BlockSpec((L * tb, 1), lambda i: (i, 0)),      # tb samples per step
            full(w1t), full(b1), full(w2cat), full(b2),
            full(fc1w), full(fc1b), full(fc2w), full(fc2b),
        ],
        # One lane-dense (1, 1, tb) output row per grid step.
        out_specs=pl.BlockSpec((1, 1, tb), lambda i: (i, 0, 0)),
    )
    out = pl.pallas_call(
        cnn_kernel,
        out_shape=jax.ShapeDtypeStruct((G, 1, tb), jnp.float32),
        grid_spec=grid_spec,
        compiler_params=pltpu.CompilerParams(
            dimension_semantics=("parallel",),
            vmem_limit_bytes=32 * 1024 * 1024),
    )(x_k, w1t, b1, w2cat, b2, fc1w, fc1b, fc2w, fc2b)
    return out.reshape(B_pad, 1)[:B]


def init_params(key, L):
    ks = jax.random.split(key, 8)
    return {
        "conv1_w": jax.random.normal(ks[0], (C1, 1, 3), jnp.float32) * 0.3,
        "conv1_b": jax.random.normal(ks[1], (C1,), jnp.float32) * 0.1,
        "conv2_w": jax.random.normal(ks[2], (C2, C1, 3), jnp.float32) * 0.15,
        "conv2_b": jax.random.normal(ks[3], (C2,), jnp.float32) * 0.1,
        "fc1_w": jax.random.normal(ks[4], (H1, C2 * L), jnp.float32) * 0.05,
        "fc1_b": jax.random.normal(ks[5], (H1,), jnp.float32) * 0.1,
        "fc2_w": jax.random.normal(ks[6], (1, H1), jnp.float32) * 0.1,
        "fc2_b": jax.random.normal(ks[7], (1,), jnp.float32) * 0.1,
    }


def pack_for_kernel(p, L, matmul_dtype=jnp.bfloat16):
    # conv1: tap-major (3, 16), f32 (VPU path).
    w1t = p["conv1_w"][:, 0, :].T.astype(jnp.float32)
    # conv2: concat the three taps along the input-channel axis -> (48, 32).
    w2cat = jnp.concatenate(
        [p["conv2_w"][:, :, k].T for k in range(3)], axis=0).astype(matmul_dtype)
    # torch flatten index is c*L + t ; kernel flatten uses t*C2 + c -> permute
    # columns, transpose to (L*C2, 64), zero-pad the hidden dim to 128 lanes.
    fc1w = (p["fc1_w"].reshape(H1, C2, L).transpose(0, 2, 1)
            .reshape(H1, L * C2).T)
    fc1w = jnp.pad(fc1w, ((0, 0), (0, H1_PAD - H1))).astype(matmul_dtype)
    fc1b = jnp.pad(p["fc1_b"].reshape(1, H1),
                   ((0, 0), (0, H1_PAD - H1))).astype(jnp.float32)
    # fc2: (1, 64) -> (8, 128); only row 0 / cols :64 are real (rest zero).
    fc2w = jnp.pad(p["fc2_w"],
                   ((0, FC2_ROWS - 1), (0, H1_PAD - H1))).astype(jnp.float32)
    fc2b = p["fc2_b"].reshape(1, 1).astype(jnp.float32)
    return (w1t,
            p["conv1_b"].reshape(1, C1).astype(jnp.float32),
            w2cat,
            p["conv2_b"].reshape(1, C2).astype(jnp.float32),
            fc1w, fc1b, fc2w, fc2b)


def cnn_forward_reference(x, p):
    """Plain-JAX mirror of the PyTorch forward (NCW convs, channel-major flatten)."""
    dn = ("NCH", "OIH", "NCH")
    y = x[:, None, :]                                                    # (B, 1, L)
    y = lax.conv_general_dilated(y, p["conv1_w"], (1,), [(1, 1)],
                                 dimension_numbers=dn) + p["conv1_b"][None, :, None]
    y = jnp.maximum(y, 0.0)
    y = lax.conv_general_dilated(y, p["conv2_w"], (1,), [(1, 1)],
                                 dimension_numbers=dn) + p["conv2_b"][None, :, None]
    y = jnp.maximum(y, 0.0)
    flat = y.reshape(x.shape[0], -1)                                     # (B, 32*L)
    h = jnp.maximum(flat @ p["fc1_w"].T + p["fc1_b"], 0.0)
    return h @ p["fc2_w"].T + p["fc2_b"]                                 # (B, 1)


if __name__ == "__main__":
    L = 16          # input_size
    B = 16          # small demo batch (tile clamps to 16 -> single grid step)

    key = jax.random.PRNGKey(0)
    kx, kp = jax.random.split(key)
    x = jax.random.normal(kx, (B, L), jnp.float32)
    params = init_params(kp, L)
    kparams = pack_for_kernel(params, L, matmul_dtype=jnp.bfloat16)

    ref = cnn_forward_reference(x, params)

    out = jax.block_until_ready(cnn_forward_pallas(x, kparams))
    assert out.shape == (B, 1)
    # bf16 matmul operands -> loose tolerance vs the f32 XLA reference.
    assert jnp.allclose(out, ref, atol=3e-2, rtol=3e-2), (out, ref)

    # Ragged batch (exercises the tile clamp + pad-to-multiple path).
    out2 = jax.block_until_ready(cnn_forward_pallas(x[:3], kparams))
    assert out2.shape == (3, 1)
    assert jnp.allclose(out2, ref[:3], atol=3e-2, rtol=3e-2), (out2, ref[:3])

    print("KERNEL_OK")
</pallas_src>

<mosaic_0001>
module attributes {stable_mosaic.version = 11 : i64} {
  func.func @cnn_kernel(%arg0: i32, %arg1: memref<256x1xf32, #tpu.memory_space<vmem>>, %arg2: memref<3x16xf32, #tpu.memory_space<vmem>>, %arg3: memref<1x16xf32, #tpu.memory_space<vmem>>, %arg4: memref<48x32xbf16, #tpu.memory_space<vmem>>, %arg5: memref<1x32xf32, #tpu.memory_space<vmem>>, %arg6: memref<512x128xbf16, #tpu.memory_space<vmem>>, %arg7: memref<1x128xf32, #tpu.memory_space<vmem>>, %arg8: memref<8x128xf32, #tpu.memory_space<vmem>>, %arg9: memref<1x1xf32, #tpu.memory_space<vmem>>, %arg10: memref<1x1x16xf32, #tpu.memory_space<vmem>>) attributes {dimension_semantics = [#tpu.dimension_semantics<parallel>], iteration_bounds = array<i64: 1>, scalar_prefetch = 0 : i64, scratch_operands = 0 : i64, tpu.core_type = #tpu.core_type<tc>, window_params = [{transform_indices = @transform_0, window_bounds = array<i64: 256, 1>}, {pipeline_mode = #tpu.pipeline_mode<synchronous>, transform_indices = @transform_1, window_bounds = array<i64: 3, 16>}, {pipeline_mode = #tpu.pipeline_mode<synchronous>, transform_indices = @transform_2, window_bounds = array<i64: 1, 16>}, {pipeline_mode = #tpu.pipeline_mode<synchronous>, transform_indices = @transform_3, window_bounds = array<i64: 48, 32>}, {pipeline_mode = #tpu.pipeline_mode<synchronous>, transform_indices = @transform_4, window_bounds = array<i64: 1, 32>}, {pipeline_mode = #tpu.pipeline_mode<synchronous>, transform_indices = @transform_5, window_bounds = array<i64: 512, 128>}, {pipeline_mode = #tpu.pipeline_mode<synchronous>, transform_indices = @transform_6, window_bounds = array<i64: 1, 128>}, {pipeline_mode = #tpu.pipeline_mode<synchronous>, transform_indices = @transform_7, window_bounds = array<i64: 8, 128>}, {pipeline_mode = #tpu.pipeline_mode<synchronous>, transform_indices = @transform_8, window_bounds = array<i64: 1, 1>}, {transform_indices = @transform_9, window_bounds = array<i64: 1, 1, 16>}]} {
    %c0 = arith.constant 0 : index
    %c0_0 = arith.constant 0 : index
    %0 = vector.load %arg1[%c0, %c0_0] : memref<256x1xf32, #tpu.memory_space<vmem>>, vector<256x1xf32>
    %1 = tpu.iota {dimensions = array<i32: 0>} : vector<256x1xi32>
    %c16_i32 = arith.constant 16 : i32
    %2 = vector.broadcast %c16_i32 : i32 to vector<256x1xi32>
    %3 = arith.cmpi slt, %1, %2 : vector<256x1xi32>
    %c240_i32 = arith.constant 240 : i32
    %4 = vector.broadcast %c240_i32 : i32 to vector<256x1xi32>
    %5 = arith.cmpi sge, %1, %4 : vector<256x1xi32>
    %c16_i32_1 = arith.constant 16 : i32
    %6 = tpu.dynamic_rotate %0 by %c16_i32_1 dim 0 : vector<256x1xf32>, i32 -> vector<256x1xf32>
    %cst = arith.constant 0.000000e+00 : f32
    %7 = vector.broadcast %cst : f32 to vector<256x1xf32>
    %8 = arith.select %3, %7, %6 : vector<256x1xi1>, vector<256x1xf32>
    %c240_i32_2 = arith.constant 240 : i32
    %9 = tpu.dynamic_rotate %0 by %c240_i32_2 dim 0 : vector<256x1xf32>, i32 -> vector<256x1xf32>
    %cst_3 = arith.constant 0.000000e+00 : f32
    %10 = vector.broadcast %cst_3 : f32 to vector<256x1xf32>
    %11 = arith.select %5, %10, %9 : vector<256x1xi1>, vector<256x1xf32>
    %c0_4 = arith.constant 0 : index
    %c0_5 = arith.constant 0 : index
    %12 = vector.load %arg2[%c0_4, %c0_5] : memref<3x16xf32, #tpu.memory_space<vmem>>, vector<1x16xf32>
    %13 = vector.broadcast %8 : vector<256x1xf32> to vector<256x16xf32>
    %14 = vector.broadcast %12 : vector<1x16xf32> to vector<256x16xf32>
    %15 = arith.mulf %13, %14 : vector<256x16xf32>
    %c1 = arith.constant 1 : index
    %c0_6 = arith.constant 0 : index
    %16 = vector.load %arg2[%c1, %c0_6] : memref<3x16xf32, #tpu.memory_space<vmem>>, vector<1x16xf32>
    %17 = vector.broadcast %0 : vector<256x1xf32> to vector<256x16xf32>
    %18 = vector.broadcast %16 : vector<1x16xf32> to vector<256x16xf32>
    %19 = arith.mulf %17, %18 : vector<256x16xf32>
    %20 = arith.addf %15, %19 : vector<256x16xf32>
    %c2 = arith.constant 2 : index
    %c0_7 = arith.constant 0 : index
    %21 = vector.load %arg2[%c2, %c0_7] : memref<3x16xf32, #tpu.memory_space<vmem>>, vector<1x16xf32>
    %22 = vector.broadcast %11 : vector<256x1xf32> to vector<256x16xf32>
    %23 = vector.broadcast %21 : vector<1x16xf32> to vector<256x16xf32>
    %24 = arith.mulf %22, %23 : vector<256x16xf32>
    %25 = arith.addf %20, %24 : vector<256x16xf32>
    %c0_8 = arith.constant 0 : index
    %c0_9 = arith.constant 0 : index
    %26 = vector.load %arg3[%c0_8, %c0_9] : memref<1x16xf32, #tpu.memory_space<vmem>>, vector<1x16xf32>
    %27 = vector.broadcast %26 : vector<1x16xf32> to vector<256x16xf32>
    %28 = arith.addf %25, %27 : vector<256x16xf32>
    %cst_10 = arith.constant 0.000000e+00 : f32
    %29 = vector.broadcast %cst_10 : f32 to vector<256x16xf32>
    %30 = arith.maximumf %28, %29 : vector<256x16xf32>
    %c16_i32_11 = arith.constant 16 : i32
    %31 = tpu.dynamic_rotate %30 by %c16_i32_11 dim 0 : vector<256x16xf32>, i32 -> vector<256x16xf32>
    %cst_12 = arith.constant 0.000000e+00 : f32
    %32 = vector.shape_cast %3 : vector<256x1xi1> to vector<256x1xi1>
    %33 = vector.broadcast %32 : vector<256x1xi1> to vector<256x16xi1>
    %34 = vector.broadcast %cst_12 : f32 to vector<256x16xf32>
    %35 = arith.select %33, %34, %31 : vector<256x16xi1>, vector<256x16xf32>
    %c240_i32_13 = arith.constant 240 : i32
    %36 = tpu.dynamic_rotate %30 by %c240_i32_13 dim 0 : vector<256x16xf32>, i32 -> vector<256x16xf32>
    %cst_14 = arith.constant 0.000000e+00 : f32
    %37 = vector.shape_cast %5 : vector<256x1xi1> to vector<256x1xi1>
    %38 = vector.broadcast %37 : vector<256x1xi1> to vector<256x16xi1>
    %39 = vector.broadcast %cst_14 : f32 to vector<256x16xf32>
    %40 = arith.select %38, %39, %36 : vector<256x16xi1>, vector<256x16xf32>
    %41 = tpu.concatenate %35, %30, %40 in 1 : vector<256x16xf32>, vector<256x16xf32>, vector<256x16xf32> -> vector<256x48xf32>
    %42 = arith.truncf %41 : vector<256x48xf32> to vector<256x48xbf16>
    %c0_15 = arith.constant 0 : index
    %c0_16 = arith.constant 0 : index
    %43 = vector.load %arg4[%c0_15, %c0_16] : memref<48x32xbf16, #tpu.memory_space<vmem>>, vector<48x32xbf16>
    %cst_17 = arith.constant dense<0.000000e+00> : vector<256x32xf32>
    %44 = tpu.matmul %42, %43, %cst_17 {dimension_numbers = #tpu.dot_dimension_numbers<[1], [0], [0], [1], [0, 0, 1, 1], [], []>} : vector<256x48xbf16>, vector<48x32xbf16>, vector<256x32xf32> -> vector<256x32xf32>
    %c0_18 = arith.constant 0 : index
    %c0_19 = arith.constant 0 : index
    %45 = vector.load %arg5[%c0_18, %c0_19] : memref<1x32xf32, #tpu.memory_space<vmem>>, vector<1x32xf32>
    %46 = vector.broadcast %45 : vector<1x32xf32> to vector<256x32xf32>
    %47 = arith.addf %44, %46 : vector<256x32xf32>
    %cst_20 = arith.constant 0.000000e+00 : f32
    %48 = vector.broadcast %cst_20 : f32 to vector<256x32xf32>
    %49 = arith.maximumf %47, %48 : vector<256x32xf32>
    %50 = arith.truncf %49 : vector<256x32xf32> to vector<256x32xbf16>
    %51 = vector.extract_strided_slice %50 {offsets = [0, 0], sizes = [16, 32], strides = [1, 1]} : vector<256x32xbf16> to vector<16x32xbf16>
    %52 = vector.extract_strided_slice %50 {offsets = [16, 0], sizes = [16, 32], strides = [1, 1]} : vector<256x32xbf16> to vector<16x32xbf16>
    %53 = vector.extract_strided_slice %50 {offsets = [32, 0], sizes = [16, 32], strides = [1, 1]} : vector<256x32xbf16> to vector<16x32xbf16>
    %54 = vector.extract_strided_slice %50 {offsets = [48, 0], sizes = [16, 32], strides = [1, 1]} : vector<256x32xbf16> to vector<16x32xbf16>
    %55 = vector.extract_strided_slice %50 {offsets = [64, 0], sizes = [16, 32], strides = [1, 1]} : vector<256x32xbf16> to vector<16x32xbf16>
    %56 = vector.extract_strided_slice %50 {offsets = [80, 0], sizes = [16, 32], strides = [1, 1]} : vector<256x32xbf16> to vector<16x32xbf16>
    %57 = vector.extract_strided_slice %50 {offsets = [96, 0], sizes = [16, 32], strides = [1, 1]} : vector<256x32xbf16> to vector<16x32xbf16>
    %58 = vector.extract_strided_slice %50 {offsets = [112, 0], sizes = [16, 32], strides = [1, 1]} : vector<256x32xbf16> to vector<16x32xbf16>
    %59 = vector.extract_strided_slice %50 {offsets = [128, 0], sizes = [16, 32], strides = [1, 1]} : vector<256x32xbf16> to vector<16x32xbf16>
    %60 = vector.extract_strided_slice %50 {offsets = [144, 0], sizes = [16, 32], strides = [1, 1]} : vector<256x32xbf16> to vector<16x32xbf16>
    %61 = vector.extract_strided_slice %50 {offsets = [160, 0], sizes = [16, 32], strides = [1, 1]} : vector<256x32xbf16> to vector<16x32xbf16>
    %62 = vector.extract_strided_slice %50 {offsets = [176, 0], sizes = [16, 32], strides = [1, 1]} : vector<256x32xbf16> to vector<16x32xbf16>
    %63 = vector.extract_strided_slice %50 {offsets = [192, 0], sizes = [16, 32], strides = [1, 1]} : vector<256x32xbf16> to vector<16x32xbf16>
    %64 = vector.extract_strided_slice %50 {offsets = [208, 0], sizes = [16, 32], strides = [1, 1]} : vector<256x32xbf16> to vector<16x32xbf16>
    %65 = vector.extract_strided_slice %50 {offsets = [224, 0], sizes = [16, 32], strides = [1, 1]} : vector<256x32xbf16> to vector<16x32xbf16>
    %66 = vector.extract_strided_slice %50 {offsets = [240, 0], sizes = [16, 32], strides = [1, 1]} : vector<256x32xbf16> to vector<16x32xbf16>
    %67 = tpu.concatenate %51, %52, %53, %54, %55, %56, %57, %58, %59, %60, %61, %62, %63, %64, %65, %66 in 1 : vector<16x32xbf16>, vector<16x32xbf16>, vector<16x32xbf16>, vector<16x32xbf16>, vector<16x32xbf16>, vector<16x32xbf16>, vector<16x32xbf16>, vector<16x32xbf16>, vector<16x32xbf16>, vector<16x32xbf16>, vector<16x32xbf16>, vector<16x32xbf16>, vector<16x32xbf16>, vector<16x32xbf16>, vector<16x32xbf16>, vector<16x32xbf16> -> vector<16x512xbf16>
    %c0_21 = arith.constant 0 : index
    %c0_22 = arith.constant 0 : index
    %68 = vector.load %arg6[%c0_21, %c0_22] : memref<512x128xbf16, #tpu.memory_space<vmem>>, vector<512x128xbf16>
    %cst_23 = arith.constant dense<0.000000e+00> : vector<16x128xf32>
    %69 = tpu.matmul %67, %68, %cst_23 {dimension_numbers = #tpu.dot_dimension_numbers<[1], [0], [0], [1], [0, 0, 1, 1], [], []>} : vector<16x512xbf16>, vector<512x128xbf16>, vector<16x128xf32> -> vector<16x128xf32>
    %c0_24 = arith.constant 0 : index
    %c0_25 = arith.constant 0 : index
    %70 = vector.load %arg7[%c0_24, %c0_25] : memref<1x128xf32, #tpu.memory_space<vmem>>, vector<1x128xf32>
    %71 = vector.broadcast %70 : vector<1x128xf32> to vector<16x128xf32>
    %72 = arith.addf %69, %71 : vector<16x128xf32>
    %cst_26 = arith.constant 0.000000e+00 : f32
    %73 = vector.broadcast %cst_26 : f32 to vector<16x128xf32>
    %74 = arith.maximumf %72, %73 : vector<16x128xf32>
    %c0_27 = arith.constant 0 : index
    %c0_28 = arith.constant 0 : index
    %75 = vector.load %arg8[%c0_27, %c0_28] : memref<8x128xf32, #tpu.memory_space<vmem>>, vector<8x128xf32>
    %76 = tpu.transpose %74, [1, 0] : vector<16x128xf32> -> vector<128x16xf32>
    %cst_29 = arith.constant dense<0.000000e+00> : vector<8x16xf32>
    %77 = tpu.matmul %75, %76, %cst_29 {dimension_numbers = #tpu.dot_dimension_numbers<[1], [0], [0], [1], [0, 0, 1, 1], [], []>} : vector<8x128xf32>, vector<128x16xf32>, vector<8x16xf32> -> vector<8x16xf32>
    %78 = vector.extract_strided_slice %77 {offsets = [0, 0], sizes = [1, 16], strides = [1, 1]} : vector<8x16xf32> to vector<1x16xf32>
    %c0_30 = arith.constant 0 : index
    %c0_31 = arith.constant 0 : index
    %79 = vector.load %arg9[%c0_30, %c0_31] : memref<1x1xf32, #tpu.memory_space<vmem>>, vector<1x1xf32>
    %80 = vector.broadcast %79 : vector<1x1xf32> to vector<1x16xf32>
    %81 = arith.addf %78, %80 : vector<1x16xf32>
    %c0_32 = arith.constant 0 : index
    %c0_33 = arith.constant 0 : index
    %c0_34 = arith.constant 0 : index
    %82 = vector.load %arg10[%c0_32, %c0_33, %c0_34] : memref<1x1x16xf32, #tpu.memory_space<vmem>>, vector<1x1x16xf32>
    %83 = vector.shape_cast %82 : vector<1x1x16xf32> to vector<1x16xf32>
    %84 = vector.shape_cast %81 : vector<1x16xf32> to vector<1x1x16xf32>
    tpu.vector_store %arg10[%c0_32, %c0_33, %c0_34], %84 {strides = array<i32>} : memref<1x1x16xf32, #tpu.memory_space<vmem>>, vector<1x1x16xf32>,
    return
  }
  func.func @transform_0(%arg0: i32) -> (i32, i32) {
    %c0_i32 = arith.constant 0 : i32
    %c0_i32_0 = arith.constant 0 : i32
    return %arg0, %c0_i32 : i32, i32
  }
  func.func @transform_1(%arg0: i32) -> (i32, i32) {
    %c0_i32 = arith.constant 0 : i32
    %c0_i32_0 = arith.constant 0 : i32
    %c0_i32_1 = arith.constant 0 : i32
    return %c0_i32, %c0_i32_0 : i32, i32
  }
  func.func @transform_2(%arg0: i32) -> (i32, i32) {
    %c0_i32 = arith.constant 0 : i32
    %c0_i32_0 = arith.constant 0 : i32
    %c0_i32_1 = arith.constant 0 : i32
    return %c0_i32, %c0_i32_0 : i32, i32
  }
  func.func @transform_3(%arg0: i32) -> (i32, i32) {
    %c0_i32 = arith.constant 0 : i32
    %c0_i32_0 = arith.constant 0 : i32
    %c0_i32_1 = arith.constant 0 : i32
    return %c0_i32, %c0_i32_0 : i32, i32
  }
  func.func @transform_4(%arg0: i32) -> (i32, i32) {
    %c0_i32 = arith.constant 0 : i32
    %c0_i32_0 = arith.constant 0 : i32
    %c0_i32_1 = arith.constant 0 : i32
    return %c0_i32, %c0_i32_0 : i32, i32
  }
  func.func @transform_5(%arg0: i32) -> (i32, i32) {
    %c0_i32 = arith.constant 0 : i32
    %c0_i32_0 = arith.constant 0 : i32
    %c0_i32_1 = arith.constant 0 : i32
    return %c0_i32, %c0_i32_0 : i32, i32
  }
  func.func @transform_6(%arg0: i32) -> (i32, i32) {
    %c0_i32 = arith.constant 0 : i32
    %c0_i32_0 = arith.constant 0 : i32
    %c0_i32_1 = arith.constant 0 : i32
    return %c0_i32, %c0_i32_0 : i32, i32
  }
  func.func @transform_7(%arg0: i32) -> (i32, i32) {
    %c0_i32 = arith.constant 0 : i32
    %c0_i32_0 = arith.constant 0 : i32
    %c0_i32_1 = arith.constant 0 : i32
    return %c0_i32, %c0_i32_0 : i32, i32
  }
  func.func @transform_8(%arg0: i32) -> (i32, i32) {
    %c0_i32 = arith.constant 0 : i32
    %c0_i32_0 = arith.constant 0 : i32
    %c0_i32_1 = arith.constant 0 : i32
    return %c0_i32, %c0_i32_0 : i32, i32
  }
  func.func @transform_9(%arg0: i32) -> (i32, i32, i32) {
    %c0_i32 = arith.constant 0 : i32
    %c0_i32_0 = arith.constant 0 : i32
    %c0_i32_1 = arith.constant 0 : i32
    return %arg0, %c0_i32, %c0_i32_0 : i32, i32, i32
  }
}

</mosaic_0001>

<bundles_post_ra>
// kernel: tpu_custom_call.1
= control target key start
LH: loop header
LB: loop body
LE: loop exit
PB: predicated region body
PF: predicated region fallthrough
CT: control target
= control target key end

     0   :  { %s3546_s0 = inlined_call_operand.vmem [shape: f32[256,1], index: 0, kind: input, shape index: {}]   ;;  %s3547_s1 = inlined_call_operand.vmem [shape: f32[3,16], index: 1, kind: input, shape index: {}]   ;;  %s3548_s2 = inlined_call_operand.vmem [shape: f32[1,16], index: 2, kind: input, shape index: {}]   ;;  %s3549_s3 = inlined_call_operand.vmem [shape: bf16[48,32], index: 3, kind: input, shape index: {}]   ;;  %s3550_s4 = inlined_call_operand.vmem [shape: f32[1,32], index: 4, kind: input, shape index: {}]   ;;  %s3551_s5 = inlined_call_operand.vmem [shape: bf16[512,128], index: 5, kind: input, shape index: {}]   ;;  %s3552_s6 = inlined_call_operand.vmem [shape: f32[1,128], index: 6, kind: input, shape index: {}]   ;;  %s3553_s7 = inlined_call_operand.vmem [shape: f32[8,128], index: 7, kind: input, shape index: {}]   ;;  %s3554_s8 = inlined_call_operand.<no memory space> [shape: f32[1,1], index: 8, kind: input, shape index: {}]   ;;  %s3555_s9 = inlined_call_operand.hbm [shape: f32[1,1,16], index: 9, kind: output, shape index: {}]  }
   0x1   :  { %v14_v0 = vstv %s3554_s8 }
   0x2   :  { %15 = vst [vmem:[#allocation2] sm:$0x1] %v14_v0 }
   0x3   :  { %v37_v1 = vld [vmem:[%s3546_s0 + $0x8] sm:$0xff]  ;;  %v2700_v2 = vmov 0   ;;  %v2701_v3 = vmov 0.0   ;;  %v36_v4 = vld [vmem:[%s3546_s0] sm:$0xff]  ;;  %v38_v5 = vld [vmem:[%s3546_s0 + $0x10] sm:$0xff] }
   0x4   :  { %2475 = vset.pattern.permute.xlu1 %v2700_v2  ;;  %2469 = vset.pattern.permute.xlu0 %v2700_v2  ;;  %v39_v6 = vld [vmem:[%s3546_s0 + $0x18] sm:$0xff]  ;;  %v40_v7 = vld [vmem:[%s3546_s0 + $0x20] sm:$0xff]  ;;  %v41_v8 = vld [vmem:[%s3546_s0 + $0x28] sm:$0xff] }
   0x5   :  { %434 = vperm.xlu1 %2475, %v37_v1   ;;  %2471 = vperm.xlu0 %2469, %v2701_v3   ;;  %v42_v9 = vld [vmem:[%s3546_s0 + $0x30] sm:$0xff]  ;;  %v43_v10 = vld [vmem:[%s3546_s0 + $0x38] sm:$0xff] }
   0x9   :  { %242 = vperm.xlu1 %2475, %v36_v4   ;;  %429 = vperm.xlu0 %2469, %v36_v4  }
   0xd   :  { %439 = vperm.xlu1 %2475, %v38_v5   ;;  %247 = vperm.xlu0 %2469, %v37_v1  }
  0x11   :  { %252 = vperm.xlu1 %2475, %v38_v5   ;;  %444 = vperm.xlu0 %2469, %v39_v6  }
  0x15   :  { %449 = vperm.xlu1 %2475, %v40_v7   ;;  %257 = vperm.xlu0 %2469, %v39_v6  }
  0x19   :  { %658 = vperm.xlu1 %2475, %v38_v5   ;;  %454 = vperm.xlu0 %2469, %v41_v8  }
  0x1d   :  { %668 = vperm.xlu1 %2475, %v40_v7   ;;  %663 = vperm.xlu0 %2469, %v39_v6  }
  0x21   :  { %678 = vperm.xlu1 %2475, %v42_v9   ;;  %673 = vperm.xlu0 %2469, %v41_v8  }
  0x25   :  { %262 = vperm.xlu1 %2475, %v40_v7  }
  0x26   :  { %16 = vsyncpa [#allocation4], 0  ;;  %683 = vperm.xlu0 %2469, %v43_v10   ;;  %v44_v11 = vld [vmem:[%s3546_s0 + $0x40] sm:$0xff]  ;;  %v45_v12 = vld [vmem:[%s3546_s0 + $0x48] sm:$0xff]  ;;  %s2702_s8 = smov 16   ;;  %s2703_s18 = smov 32  }
  0x27   :  { %v46_v13 = vld [vmem:[%s3546_s0 + $0x50] sm:$0xff]  ;;  %v47_v14 = vld [vmem:[%s3546_s0 + $0x58] sm:$0xff]  ;;  %v48_v15 = vld [vmem:[%s3546_s0 + $0x60] sm:$0xff]  ;;  %vm1403_vm0 = vcmask 130048   ;;  %vm1436_vm1 = vcmask 261120   ;;  %vm1516_vm2 = vcmask 392192  }
  0x28   :  { %v49_v16 = vld [vmem:[%s3546_s0 + $0x68] sm:$0xff]  ;;  %v50_v17 = vld [vmem:[%s3546_s0 + $0x70] sm:$0xff]  ;;  %v51_v18 = vld [vmem:[%s3546_s0 + $0x78] sm:$0xff]  ;;  %s2705_s20 = smov 96   ;;  %vm1813_vm3 = vcmask 523264   ;;  %vm1816_vm4 = vcmask 785408  }
  0x29   :  { %459 = vperm.xlu1 %2475, %v42_v9   ;;  %v52_v19 = vld [vmem:[%s3546_s0 + $0x80] sm:$0xff]  ;;  %v53_v20 = vld [vmem:[%s3546_s0 + $0x88] sm:$0xff]  ;;  %v54_v21 = vld [vmem:[%s3546_s0 + $0x90] sm:$0xff]  ;;  %vm2707_vm5 = vmmov 0   ;;  %vm2273_vm6 = vcmask 122880  }
  0x2a   :  { %267 = vperm.xlu0 %2469, %v41_v8   ;;  %v55_v22 = vld [vmem:[%s3546_s0 + $0x98] sm:$0xff]  ;;  %v56_v23 = vld [vmem:[%s3546_s0 + $0xa0] sm:$0xff]  ;;  %v57_v24 = vld [vmem:[%s3546_s0 + $0xa8] sm:$0xff] }
  0x2b   :  { %v58_v25 = vld [vmem:[%s3546_s0 + $0xb0] sm:$0xff]  ;;  %v59_v26 = vld [vmem:[%s3546_s0 + $0xb8] sm:$0xff]  ;;  %v60_v33 = vld [vmem:[%s3546_s0 + $0xc0] sm:$0xff] }
  0x2c   :  { %v61_v36 = vld [vmem:[%s3546_s0 + $0xc8] sm:$0xff]  ;;  %v62_v39 = vld [vmem:[%s3546_s0 + $0xd0] sm:$0xff]  ;;  %v63_v42 = vld [vmem:[%s3546_s0 + $0xd8] sm:$0xff] }
  0x2d   :  { %272 = vperm.xlu1 %2475, %v42_v9   ;;  %v64_v49 = vld [vmem:[%s3546_s0 + $0xe0] sm:$0xff]  ;;  %v2865_v54 = vld [vmem:[%s3546_s0 + $0xe8] sm:$0xff]  ;;  %v66_v63 = vld [vmem:[%s3546_s0 + $0xf0] sm:$0xff] }
  0x2e   :  { %464 = vperm.xlu0 %2469, %v43_v10   ;;  %v2860_v53 = vld [vmem:[%s3547_s1] ss:$0 sm:$0xff]  ;;  %v2870_v55 = vld [vmem:[%s3547_s1 + $0x1] ss:$0 sm:$0xff]  ;;  %v2881_v62 = vld [vmem:[%s3547_s1 + $0x2] ss:$0 sm:$0xff] }
  0x31   :  { %469 = vperm.xlu1 %2475, %v44_v11  }
  0x32   :  { %277 = vperm.xlu0 %2469, %v43_v10  }
  0x35   :  { %688 = vperm.xlu1 %2475, %v44_v11  }
  0x36   :  { %474 = vperm.xlu0 %2469, %v45_v12  }
  0x39   :  { %698 = vperm.xlu1 %2475, %v46_v13  }
  0x3a   :  { %693 = vperm.xlu0 %2469, %v45_v12  }
  0x3d   :  { %282 = vperm.xlu1 %2475, %v44_v11  }
  0x3e   :  { %703 = vperm.xlu0 %2469, %v47_v14  }
  0x41   :  { %479 = vperm.xlu1 %2475, %v46_v13  }
  0x42   :  { %287 = vperm.xlu0 %2469, %v45_v12  }
  0x45   :  { %292 = vperm.xlu1 %2475, %v46_v13  }
  0x46   :  { %484 = vperm.xlu0 %2469, %v47_v14  }
  0x49   :  { %489 = vperm.xlu1 %2475, %v48_v15  }
  0x4a   :  { %297 = vperm.xlu0 %2469, %v47_v14  }
  0x4d   :  { %708 = vperm.xlu1 %2475, %v48_v15  }
  0x4e   :  { %494 = vperm.xlu0 %2469, %v49_v16  }
  0x51   :  { %718 = vperm.xlu1 %2475, %v50_v17  }
  0x52   :  { %713 = vperm.xlu0 %2469, %v49_v16  }
  0x55   :  { %302 = vperm.xlu1 %2475, %v48_v15  }
  0x56   :  { %723 = vperm.xlu0 %2469, %v51_v18  }
  0x59   :  { %499 = vperm.xlu1 %2475, %v50_v17  }
  0x5a   :  { %307 = vperm.xlu0 %2469, %v49_v16  }
  0x5d   :  { %312 = vperm.xlu1 %2475, %v50_v17  }
  0x5e   :  { %504 = vperm.xlu0 %2469, %v51_v18  }
  0x61   :  { %509 = vperm.xlu1 %2475, %v52_v19  }
  0x62   :  { %317 = vperm.xlu0 %2469, %v51_v18  }
  0x65   :  { %728 = vperm.xlu1 %2475, %v52_v19  }
  0x66   :  { %514 = vperm.xlu0 %2469, %v53_v20  }
  0x69   :  { %738 = vperm.xlu1 %2475, %v54_v21  }
  0x6a   :  { %733 = vperm.xlu0 %2469, %v53_v20  }
  0x6d   :  { %322 = vperm.xlu1 %2475, %v52_v19  }
  0x6e   :  { %743 = vperm.xlu0 %2469, %v55_v22  }
  0x71   :  { %519 = vperm.xlu1 %2475, %v54_v21  }
  0x72   :  { %327 = vperm.xlu0 %2469, %v53_v20   ;;  %v67_v20 = vld [vmem:[%s3546_s0 + $0xf8] sm:$0xff] }
  0x75   :  { %332 = vperm.xlu1 %2475, %v54_v21  }
  0x76   :  { %524 = vperm.xlu0 %2469, %v55_v22  }
  0x79   :  { %529 = vperm.xlu1 %2475, %v56_v23  }
  0x7a   :  { %337 = vperm.xlu0 %2469, %v55_v22  }
  0x7d   :  { %748 = vperm.xlu1 %2475, %v56_v23  }
  0x7e   :  { %534 = vperm.xlu0 %2469, %v57_v24  }
  0x81   :  { %758 = vperm.xlu1 %2475, %v58_v25  }
  0x82   :  { %753 = vperm.xlu0 %2469, %v57_v24  }
  0x84   :  { %v435_v27 = vpop.permute.xlu1 %434  ;;  %v2835_v28 = vpop.permute.xlu0 %2471 }
  0x85   :  { %342 = vperm.xlu1 %2475, %v56_v23   ;;  %v2474_v52 = vunpack.i.h.bf16 %v2835_v28  ;;  %v2473_v59 = vunpack.i.l.bf16 %v2835_v28  ;;  %v592_v0 = vmul.f32 %v2870_v55, %v435_v27 }
  0x86   :  { %763 = vperm.xlu0 %2469, %v59_v26  }
  0x87   :  { %v395_v60 = vmul.f32 %v2474_v52, %v2860_v53  ;;  %v394_v12 = vmul.f32 %v2473_v59, %v2860_v53 }
  0x88   :  { %v243_v29 = vpop.permute.xlu1 %242  ;;  %v430_v30 = vpop.permute.xlu0 %429 }
  0x89   :  { %539 = vperm.xlu1 %2475, %v58_v25   ;;  %v396_v4 = vmul.f32 %v2860_v53, %v243_v29  ;;  %v591_v5 = vmul.f32 %v2870_v55, %v430_v30  ;;  %v624_v15 = vadd.f32 %v592_v0, %v395_v60  ;;  %v2910_v29 = vld [vmem:[%s3548_s2] ss:$0 sm:$0xff]  ;;  %s2704_s2 = smov 64  }
  0x8a   :  { %347 = vperm.xlu0 %2469, %v57_v24  }
  0x8b   :  { %v623_v21 = vadd.f32 %v591_v5, %v394_v12 }
  0x8c   :  { %v440_v31 = vpop.permute.xlu1 %439  ;;  %v248_v32 = vpop.permute.xlu0 %247 }
  0x8d   :  { %352 = vperm.xlu1 %2475, %v58_v25   ;;  %v593_v61 = vmul.f32 %v2870_v55, %v440_v31  ;;  %v397_v1 = vmul.f32 %v2860_v53, %v248_v32 }
  0x8e   :  { %544 = vperm.xlu0 %2469, %v59_v26  }
  0x8f   :  { %v625_v13 = vadd.f32 %v593_v61, %v396_v4 }
  0x90   :  { %v2840_v34 = vpop.permute.xlu1 %252  ;;  %v445_v35 = vpop.permute.xlu0 %444 }
  0x91   :  { %549 = vperm.xlu1 %2475, %v60_v33   ;;  %v594_v57 = vmul.f32 %v2870_v55, %v445_v35  ;;  %v398_v25 = vmul.f32 %v2860_v53, %v2840_v34 }
  0x92   :  { %357 = vperm.xlu0 %2469, %v59_v26  }
  0x93   :  { %v626_v9 = vadd.f32 %v594_v57, %v397_v1 }
  0x94   :  { %v450_v37 = vpop.permute.xlu1 %449  ;;  %v258_v38 = vpop.permute.xlu0 %257 }
  0x95   :  { %768 = vperm.xlu1 %2475, %v60_v33   ;;  %v595_v16 = vmul.f32 %v2870_v55, %v450_v37  ;;  %v399_v17 = vmul.f32 %v2860_v53, %v258_v38 }
  0x96   :  { %554 = vperm.xlu0 %2469, %v61_v36  }
  0x97   :  { %v627_v32 = vadd.f32 %v595_v16, %v398_v25  ;;  %v2643_v25 = vld [vmem:[%s3549_s3 + $0x10] sm:$0xff]  }
  0x98   :  { %v659_v40 = vpop.permute.xlu1 %658  ;;  %v455_v41 = vpop.permute.xlu0 %454 }
  0x99   :  { %778 = vperm.xlu1 %2475, %v62_v39   ;;  %v596_v10 = vmul.f32 %v2870_v55, %v455_v41  ;;  %v820_v14 = vmul.f32 %v2881_v62, %v659_v40 }
  0x9a   :  { %773 = vperm.xlu0 %2469, %v61_v36  }
  0x9b   :  { %v628_v26 = vadd.f32 %v596_v10, %v399_v17  ;;  %v852_v30 = vadd.f32 %v820_v14, %v623_v21  ;;  %v2642_v17 = vld [vmem:[%s3549_s3 + $0x8] sm:$0xff]  }
  0x9c   :  { %v669_v43 = vpop.permute.xlu1 %668  ;;  %v664_v44 = vpop.permute.xlu0 %663 }
  0x9d   :  { %362 = vperm.xlu1 %2475, %v60_v33   ;;  %v822_v6 = vmul.f32 %v2881_v62, %v669_v43  ;;  %v821_v7 = vmul.f32 %v2881_v62, %v664_v44  ;;  %v2928_v44 = vadd.f32 %v2910_v29, %v852_v30 }
  0x9e   :  { %783 = vperm.xlu0 %2469, %v63_v42  }
  0x9f   :  { %v854_v22 = vadd.f32 %v822_v6, %v625_v13  ;;  %v853_v23 = vadd.f32 %v821_v7, %v624_v15  ;;  %v923_v5 = vmax.f32 %v2928_v44, 0.0  ;;  %v2641_v6 = vld [vmem:[%s3549_s3] sm:$0xff]  }
  0xa0   :  { %v679_v45 = vpop.permute.xlu1 %678  ;;  %v674_v46 = vpop.permute.xlu0 %673  ;;  %2412 = vmatprep.subr.bf16.mxu0 %v2641_v6 }
  0xa1   :  { %559 = vperm.xlu1 %2475, %v62_v39   ;;  %v823_v2 = vmul.f32 %v2881_v62, %v674_v46  ;;  %v824_v27 = vmul.f32 %v2881_v62, %v679_v45  ;;  %v2921_v37 = vadd.f32 %v2910_v29, %v853_v23  ;;  %2413 = vmatpush3.bf16.msra.mxu0 %v2641_v6 }
  0xa2   :  { %367 = vperm.xlu0 %2469, %v61_v36   ;;  %v2918_v36 = vadd.f32 %v2910_v29, %v854_v22  ;;  %2414 = vmatprep.subr.bf16.mxu0 %v2642_v17 }
  0xa3   :  { %v855_v18 = vadd.f32 %v823_v2, %v626_v9  ;;  %v856_v40 = vadd.f32 %v824_v27, %v627_v32  ;;  %v924_v60 = vmax.f32 %v2921_v37, 0.0 }
  0xa4   :  { %v2851_v47 = vpop.permute.xlu1 %262  ;;  %v925_v52 = vmax.f32 %v2918_v36, 0.0 }
  0xa5   :  { %372 = vperm.xlu1 %2475, %v62_v39   ;;  %v684_v48 = vpop.permute.xlu0 %683  ;;  %v2914_v33 = vadd.f32 %v2910_v29, %v855_v18  ;;  %v400_v41 = vmul.f32 %v2860_v53, %v2851_v47  ;;  %v2942_v61 = vadd.f32 %v2910_v29, %v856_v40  ;;  %v2481_v12 = vpack.i.bf16 %v924_v60, %v923_v5 }
  0xa6   :  { %564 = vperm.xlu0 %2469, %v63_v42   ;;  %v825_v19 = vmul.f32 %v2881_v62, %v684_v48  ;;  %2415 = vmatpush3.bf16.msra.mxu0 %v2642_v17 }
  0xa7   :  { %v927_v13 = vmax.f32 %v2942_v61, 0.0  ;;  %2416 = vmatprep.subr.bf16.mxu0 %v2643_v25 }
  0xa8   :  { %v460_v50 = vpop.permute.xlu1 %459  ;;  %v857_v35 = vadd.f32 %v825_v19, %v628_v26 }
  0xa9   :  { %569 = vperm.xlu1 %2475, %v64_v49   ;;  %v268_v51 = vpop.permute.xlu0 %267  ;;  %v597_v34 = vmul.f32 %v2870_v55, %v460_v50 }
  0xaa   :  { %377 = vperm.xlu0 %2469, %v63_v42   ;;  %v401_v38 = vmul.f32 %v2860_v53, %v268_v51  ;;  %v2935_v50 = vadd.f32 %v2910_v29, %v857_v35  ;;  %2417 = vmatpush3.bf16.msra.mxu0 %v2643_v25 }
  0xab   :  { %v629_v47 = vadd.f32 %v597_v34, %v400_v41 }
  0xac   :  { %v2872_v56 = vpop.permute.xlu1 %272  ;;  %v928_v7 = vmax.f32 %v2935_v50, 0.0 }
  0xad   :  { %788 = vperm.xlu1 %2475, %v64_v49   ;;  %v465_v58 = vpop.permute.xlu0 %464 }
  0xae   :  { %574 = vperm.xlu0 %2469, %v2865_v54   ;;  %v598_v31 = vmul.f32 %v2870_v55, %v465_v58 }
  0xb0   :  { %v470_v8 = vpop.permute.xlu1 %469  ;;  %v630_v45 = vadd.f32 %v598_v31, %v401_v38 }
  0xb1   :  { %798 = vperm.xlu1 %2475, %v66_v63   ;;  %v278_v11 = vpop.permute.xlu0 %277  ;;  %v599_v51 = vmul.f32 %v2870_v55, %v470_v8 }
  0xb2   :  { %793 = vperm.xlu0 %2469, %v2865_v54   ;;  %v403_v57 = vmul.f32 %v2860_v53, %v278_v11 }
  0xb4   :  { %v689_v24 = vpop.permute.xlu1 %688 }
  0xb5   :  { %382 = vperm.xlu1 %2475, %v64_v49   ;;  %v475_v28 = vpop.permute.xlu0 %474  ;;  %v826_v42 = vmul.f32 %v2881_v62, %v689_v24  ;;  %v926_v49 = vmax.f32 %v2914_v33, 0.0 }
  0xb6   :  { %803 = vperm.xlu0 %2469, %v67_v20   ;;  %v600_v46 = vmul.f32 %v2870_v55, %v475_v28 }
  0xb7   :  { %v2486_v9 = vpack.i.bf16 %v926_v49, %v925_v52 }
  0xb8   :  { %v699_v39 = vpop.permute.xlu1 %698  ;;  %v632_v2 = vadd.f32 %v600_v46, %v403_v57 }
  0xb9   :  { %579 = vperm.xlu1 %2475, %v66_v63   ;;  %v694_v43 = vpop.permute.xlu0 %693  ;;  %v858_v63 = vadd.f32 %v826_v42, %v629_v47  ;;  %v828_v0 = vmul.f32 %v2881_v62, %v699_v39 }
  0xba   :  { %v827_v48 = vmul.f32 %v2881_v62, %v694_v43  ;;  %387 = vperm.xlu0 %2469, %v2865_v54   ;;  %v402_v54 = vmul.f32 %v2860_v53, %v2872_v56 }
  0xbb   :  { %v2967_v14 = vadd.f32 %v2910_v29, %v858_v63 }
  0xbc   :  { %v859_v58 = vadd.f32 %v827_v48, %v630_v45  ;;  %v283_v59 = vpop.permute.xlu1 %282  ;;  %v631_v8 = vadd.f32 %v599_v51, %v402_v54 }
  0xbd   :  { %2477 = vperm.xlu1 %2475, %v2701_v3   ;;  %v704_v1 = vpop.permute.xlu0 %703  ;;  %v929_v22 = vmax.f32 %v2967_v14, 0.0  ;;  %v404_v34 = vmul.f32 %v2860_v53, %v283_v59 }
  0xbe   :  { %v829_v4 = vmul.f32 %v2881_v62, %v704_v1  ;;  %584 = vperm.xlu0 %2469, %v67_v20   ;;  %v2955_v56 = vadd.f32 %v2910_v29, %v859_v58  ;;  %v860_v15 = vadd.f32 %v828_v0, %v631_v8  ;;  %v2496_v20 = vpack.i.bf16 %v928_v7, %v927_v13 }
  0xc0   :  { %v861_v10 = vadd.f32 %v829_v4, %v632_v2  ;;  %v480_v11 = vpop.permute.xlu1 %479  ;;  %v930_v18 = vmax.f32 %v2955_v56, 0.0  ;;  %v2984_v23 = vadd.f32 %v2910_v29, %v860_v15 }
  0xc1   :  { %2487 = vrot.lane.b32.xlu1 %v2486_v9, %s2702_s8  ;;  %v288_v16 = vpop.permute.xlu0 %287  ;;  %v601_v32 = vmul.f32 %v2870_v55, %v480_v11 }
  0xc2   :  { %2482 = vrot.lane.b32.xlu0 %v2481_v12, %s2702_s8  ;;  %v2976_v19 = vadd.f32 %v2910_v29, %v861_v10  ;;  %v2506_v27 = vpack.i.bf16 %v930_v18, %v929_v22  ;;  %v931_v30 = vmax.f32 %v2984_v23, 0.0  ;;  %v405_v45 = vmul.f32 %v2860_v53, %v288_v16 }
  0xc3   :  { %v633_v41 = vadd.f32 %v601_v32, %v404_v34 }
  0xc4   :  { %v293_v21 = vpop.permute.xlu1 %292  ;;  %v932_v26 = vmax.f32 %v2976_v19, 0.0 }
  0xc5   :  { %2497 = vrot.lane.b32.xlu1 %v2496_v20, %s2703_s18  ;;  %v485_v24 = vpop.permute.xlu0 %484  ;;  %v406_v46 = vmul.f32 %v2860_v53, %v293_v21 }
  0xc6   :  { %2492 = vrot.lane.b32.xlu0 %v2486_v9, %s2703_s18  ;;  %v2516_v35 = vpack.i.bf16 %v932_v26, %v931_v30  ;;  %v602_v42 = vmul.f32 %v2870_v55, %v485_v24 }
  0xc8   :  { %v490_v28 = vpop.permute.xlu1 %489  ;;  %v634_v58 = vadd.f32 %v602_v42, %v405_v45 }
  0xc9   :  { %2507 = vrot.lane.b32.xlu1 %v2506_v27, %s2702_s8  ;;  %v298_v31 = vpop.permute.xlu0 %297  ;;  %v603_v43 = vmul.f32 %v2870_v55, %v490_v28 }
  0xca   :  { %2502 = vrot.lane.b32.xlu0 %v2496_v20, %s2702_s8  ;;  %v407_v0 = vmul.f32 %v2860_v53, %v298_v31 }
  0xcb   :  { %v635_v59 = vadd.f32 %v603_v43, %v406_v46 }
  0xcc   :  { %v709_v38 = vpop.permute.xlu1 %708 }
  0xcd   :  { %v830_v39 = vmul.f32 %v2881_v62, %v709_v38  ;;  %2517 = vrot.lane.b32.xlu1 %v2516_v35, %s2703_s18  ;;  %v495_v40 = vpop.permute.xlu0 %494 }
  0xce   :  { %2512 = vrot.lane.b32.xlu0 %v2506_v27, %s2703_s18  ;;  %v604_v54 = vmul.f32 %v2870_v55, %v495_v40 }
  0xcf   :  { %v862_v48 = vadd.f32 %v830_v39, %v633_v41 }
  0xd0   :  { %v719_v47 = vpop.permute.xlu1 %718  ;;  %v636_v9 = vadd.f32 %v604_v54, %v407_v0 }
  0xd1   :  { %v832_v51 = vmul.f32 %v2881_v62, %v719_v47  ;;  %v714_v57 = vpop.permute.xlu0 %713  ;;  %v3018_v1 = vadd.f32 %v2910_v29, %v862_v48 }
  0xd2   :  { %v831_v63 = vmul.f32 %v2881_v62, %v714_v57  ;;  %2522 = vrot.lane.b32.xlu0 %v2516_v35, %s2702_s8 }
  0xd3   :  { %v864_v2 = vadd.f32 %v832_v51, %v635_v59  ;;  %v3570_v12 = vmax.f32 %v3018_v1, 0.0 }
  0xd4   :  { %v863_v4 = vadd.f32 %v831_v63, %v634_v58  ;;  %v303_v6 = vpop.permute.xlu1 %302 }
  0xd5   :  { %v724_v8 = vpop.permute.xlu0 %723  ;;  %v3026_v15 = vadd.f32 %v2910_v29, %v864_v2  ;;  %v408_v40 = vmul.f32 %v2860_v53, %v303_v6 }
  0xd6   :  { %v3021_v10 = vadd.f32 %v2910_v29, %v863_v4  ;;  %v833_v11 = vmul.f32 %v2881_v62, %v724_v8 }
  0xd7   :  { %v3568_v27 = vmax.f32 %v3026_v15, 0.0 }
  0xd8   :  { %v934_v16 = vmax.f32 %v3021_v10, 0.0  ;;  %v865_v17 = vadd.f32 %v833_v11, %v636_v9  ;;  %v500_v20 = vpop.permute.xlu1 %499 }
  0xd9   :  { %v308_v21 = vpop.permute.xlu0 %307  ;;  %v605_v39 = vmul.f32 %v2870_v55, %v500_v20 }
  0xda   :  { %v3030_v24 = vadd.f32 %v2910_v29, %v865_v17  ;;  %v2531_v25 = vpack.i.bf16 %v934_v16, %v3570_v12  ;;  %v409_v47 = vmul.f32 %v2860_v53, %v308_v21 }
  0xdb   :  { %v637_v45 = vadd.f32 %v605_v39, %v408_v40 }
  0xdc   :  { %v3569_v28 = vmax.f32 %v3030_v24, 0.0  ;;  %v313_v31 = vpop.permute.xlu1 %312  ;;  %2532 = vrot.lane.b32.xlu0 %v2531_v25, %s2703_s18  ;;  %2527 = vrot.lane.b32.xlu1 %v2531_v25, %s2702_s8 }
  0xdd   :  { %v505_v32 = vpop.permute.xlu0 %504  ;;  %v410_v51 = vmul.f32 %v2860_v53, %v313_v31 }
  0xde   :  { %v2541_v35 = vpack.i.bf16 %v3569_v28, %v3568_v27  ;;  %v606_v46 = vmul.f32 %v2870_v55, %v505_v32 }
  0xe0   :  { %v510_v34 = vpop.permute.xlu1 %509  ;;  %2542 = vrot.lane.b32.xlu0 %v2541_v35, %s2702_s8  ;;  %2537 = vrot.lane.b32.xlu1 %v2541_v35, %s2703_s18  ;;  %v638_v63 = vadd.f32 %v606_v46, %v409_v47 }
  0xe1   :  { %v318_v38 = vpop.permute.xlu0 %317  ;;  %v607_v48 = vmul.f32 %v2870_v55, %v510_v34 }
  0xe2   :  { %v411_v6 = vmul.f32 %v2860_v53, %v318_v38 }
  0xe3   :  { %v639_v0 = vadd.f32 %v607_v48, %v410_v51 }
  0xe4   :  { %v729_v41 = vpop.permute.xlu1 %728 }
  0xe5   :  { %v834_v42 = vmul.f32 %v2881_v62, %v729_v41  ;;  %v515_v43 = vpop.permute.xlu0 %514 }
  0xe6   :  { %v608_v2 = vmul.f32 %v2870_v55, %v515_v43 }
  0xe7   :  { %v866_v57 = vadd.f32 %v834_v42, %v637_v45 }
  0xe8   :  { %v739_v58 = vpop.permute.xlu1 %738  ;;  %v640_v21 = vadd.f32 %v608_v2, %v411_v6 }
  0xe9   :  { %v836_v59 = vmul.f32 %v2881_v62, %v739_v58  ;;  %v734_v54 = vpop.permute.xlu0 %733  ;;  %v3058_v8 = vadd.f32 %v2910_v29, %v866_v57 }
  0xea   :  { %v835_v4 = vmul.f32 %v2881_v62, %v734_v54 }
  0xeb   :  { %v868_v9 = vadd.f32 %v836_v59, %v639_v0  ;;  %v3562_v32 = vmax.f32 %v3058_v8, 0.0 }
  0xec   :  { %v867_v11 = vadd.f32 %v835_v4, %v638_v63  ;;  %v323_v17 = vpop.permute.xlu1 %322 }
  0xed   :  { %v744_v20 = vpop.permute.xlu0 %743  ;;  %v3066_v35 = vadd.f32 %v2910_v29, %v868_v9  ;;  %v412_v59 = vmul.f32 %v2860_v53, %v323_v17 }
  0xee   :  { %v3061_v25 = vadd.f32 %v2910_v29, %v867_v11  ;;  %v837_v31 = vmul.f32 %v2881_v62, %v744_v20 }
  0xef   :  { %v3560_v43 = vmax.f32 %v3066_v35, 0.0 }
  0xf0   :  { %v3567_v34 = vmax.f32 %v3061_v25, 0.0  ;;  %v869_v38 = vadd.f32 %v837_v31, %v640_v21  ;;  %v520_v39 = vpop.permute.xlu1 %519 }
  0xf1   :  { %v328_v40 = vpop.permute.xlu0 %327  ;;  %v609_v58 = vmul.f32 %v2870_v55, %v520_v39 }
  0xf2   :  { %v3070_v41 = vadd.f32 %v2910_v29, %v869_v38  ;;  %v2551_v42 = vpack.i.bf16 %v3567_v34, %v3562_v32  ;;  %v413_v9 = vmul.f32 %v2860_v53, %v328_v40 }
  0xf3   :  { %v641_v2 = vadd.f32 %v609_v58, %v412_v59 }
  0xf4   :  { %v3561_v45 = vmax.f32 %v3070_v41, 0.0  ;;  %v333_v46 = vpop.permute.xlu1 %332  ;;  %2552 = vrot.lane.b32.xlu0 %v2551_v42, %s2703_s18  ;;  %2547 = vrot.lane.b32.xlu1 %v2551_v42, %s2702_s8 }
  0xf5   :  { %v525_v48 = vpop.permute.xlu0 %524  ;;  %v414_v11 = vmul.f32 %v2860_v53, %v333_v46 }
  0xf6   :  { %v2561_v47 = vpack.i.bf16 %v3561_v45, %v3560_v43  ;;  %v610_v4 = vmul.f32 %v2870_v55, %v525_v48 }
  0xf8   :  { %v530_v51 = vpop.permute.xlu1 %529  ;;  %2562 = vrot.lane.b32.xlu0 %v2561_v47, %s2702_s8  ;;  %2557 = vrot.lane.b32.xlu1 %v2561_v47, %s2703_s18  ;;  %v642_v39 = vadd.f32 %v610_v4, %v413_v9 }
  0xf9   :  { %v338_v57 = vpop.permute.xlu0 %337  ;;  %v611_v6 = vmul.f32 %v2870_v55, %v530_v51 }
  0xfa   :  { %v415_v58 = vmul.f32 %v2860_v53, %v338_v57 }
  0xfb   :  { %v643_v17 = vadd.f32 %v611_v6, %v414_v11 }
  0xfc   :  { %v749_v54 = vpop.permute.xlu1 %748 }
  0xfd   :  { %v838_v63 = vmul.f32 %v2881_v62, %v749_v54  ;;  %v535_v0 = vpop.permute.xlu0 %534 }
  0xfe   :  { %v612_v42 = vmul.f32 %v2870_v55, %v535_v0 }
  0xff   :  { %v870_v20 = vadd.f32 %v838_v63, %v641_v2 }
 0x100   :  { %v759_v21 = vpop.permute.xlu1 %758  ;;  %v644_v54 = vadd.f32 %v612_v42, %v415_v58 }
 0x101   :  { %v840_v31 = vmul.f32 %v2881_v62, %v759_v21  ;;  %v754_v38 = vpop.permute.xlu0 %753  ;;  %v3098_v48 = vadd.f32 %v2910_v29, %v870_v20 }
 0x102   :  { %v839_v47 = vmul.f32 %v2881_v62, %v754_v38 }
 0x103   :  { %v872_v51 = vadd.f32 %v840_v31, %v643_v17  ;;  %v3556_v4 = vmax.f32 %v3098_v48, 0.0 }
 0x104   :  { %v871_v40 = vadd.f32 %v839_v47, %v642_v39  ;;  %v343_v59 = vpop.permute.xlu1 %342 }
 0x105   :  { %v764_v46 = vpop.permute.xlu0 %763  ;;  %v3106_v0 = vadd.f32 %v2910_v29, %v872_v51 }
 0x106   :  { %v3101_v63 = vadd.f32 %v2910_v29, %v871_v40  ;;  %v841_v2 = vmul.f32 %v2881_v62, %v764_v46  ;;  %v416_v40 = vmul.f32 %v2860_v53, %v343_v59 }
 0x107   :  { %v3557_v31 = vmax.f32 %v3106_v0, 0.0 }
 0x108   :  { %v3559_v57 = vmax.f32 %v3101_v63, 0.0  ;;  %v873_v6 = vadd.f32 %v841_v2, %v644_v54  ;;  %v540_v9 = vpop.permute.xlu1 %539 }
 0x109   :  { %v348_v11 = vpop.permute.xlu0 %347  ;;  %v613_v51 = vmul.f32 %v2870_v55, %v540_v9 }
 0x10a   :  { %v3110_v20 = vadd.f32 %v2910_v29, %v873_v6  ;;  %v2571_v21 = vpack.i.bf16 %v3559_v57, %v3556_v4 }
 0x10b   :  { %v645_v6 = vadd.f32 %v613_v51, %v416_v40 }
 0x10c   :  { %v3558_v38 = vmax.f32 %v3110_v20, 0.0  ;;  %v353_v39 = vpop.permute.xlu1 %352  ;;  %2572 = vrot.lane.b32.xlu0 %v2571_v21, %s2703_s18  ;;  %2567 = vrot.lane.b32.xlu1 %v2571_v21, %s2702_s8 }
 0x10d   :  { %v545_v17 = vpop.permute.xlu0 %544 }
 0x10e   :  { %v2581_v42 = vpack.i.bf16 %v3558_v38, %v3557_v31  ;;  %v614_v21 = vmul.f32 %v2870_v55, %v545_v17  ;;  %v417_v31 = vmul.f32 %v2860_v53, %v348_v11  ;;  %v418_v38 = vmul.f32 %v2860_v53, %v353_v39 }
 0x110   :  { %v550_v47 = vpop.permute.xlu1 %549  ;;  %2582 = vrot.lane.b32.xlu0 %v2581_v42, %s2702_s8  ;;  %2577 = vrot.lane.b32.xlu1 %v2581_v42, %s2703_s18  ;;  %v646_v45 = vadd.f32 %v614_v21, %v417_v31 }
 0x111   :  { %v358_v58 = vpop.permute.xlu0 %357  ;;  %v615_v4 = vmul.f32 %v2870_v55, %v550_v47 }
 0x112   :  { %v419_v51 = vmul.f32 %v2860_v53, %v358_v58 }
 0x113   :  { %v647_v59 = vadd.f32 %v615_v4, %v418_v38 }
 0x114   :  { %v769_v46 = vpop.permute.xlu1 %768 }
 0x115   :  { %v842_v54 = vmul.f32 %v2881_v62, %v769_v46  ;;  %v555_v2 = vpop.permute.xlu0 %554 }
 0x116   :  { %v616_v32 = vmul.f32 %v2870_v55, %v555_v2 }
 0x117   :  { %v874_v57 = vadd.f32 %v842_v54, %v645_v6 }
 0x118   :  { %v779_v42 = vpop.permute.xlu1 %778  ;;  %v648_v54 = vadd.f32 %v616_v32, %v419_v51 }
 0x119   :  { %v844_v43 = vmul.f32 %v2881_v62, %v779_v42  ;;  %v774_v9 = vpop.permute.xlu0 %773  ;;  %v3138_v17 = vadd.f32 %v2910_v29, %v874_v57 }
 0x11a   :  { %v843_v46 = vmul.f32 %v2881_v62, %v774_v9 }
 0x11b   :  { %v876_v47 = vadd.f32 %v844_v43, %v647_v59  ;;  %v3563_v4 = vmax.f32 %v3138_v17, 0.0 }
 0x11c   :  { %v875_v11 = vadd.f32 %v843_v46, %v646_v45  ;;  %v363_v40 = vpop.permute.xlu1 %362 }
 0x11d   :  { %v784_v39 = vpop.permute.xlu0 %783  ;;  %v3146_v38 = vadd.f32 %v2910_v29, %v876_v47 }
 0x11e   :  { %v3141_v6 = vadd.f32 %v2910_v29, %v875_v11  ;;  %v845_v31 = vmul.f32 %v2881_v62, %v784_v39  ;;  %v420_v39 = vmul.f32 %v2860_v53, %v363_v40 }
 0x11f   :  { %v3565_v45 = vmax.f32 %v3146_v38, 0.0 }
 0x120   :  { %v3564_v58 = vmax.f32 %v3141_v6, 0.0  ;;  %v877_v2 = vadd.f32 %v845_v31, %v648_v54  ;;  %v560_v57 = vpop.permute.xlu1 %559 }
 0x121   :  { %v368_v21 = vpop.permute.xlu0 %367  ;;  %v617_v11 = vmul.f32 %v2870_v55, %v560_v57 }
 0x122   :  { %v3150_v43 = vadd.f32 %v2910_v29, %v877_v2  ;;  %v2591_v32 = vpack.i.bf16 %v3564_v58, %v3563_v4 }
 0x124   :  { %v3566_v42 = vmax.f32 %v3150_v43, 0.0  ;;  %v373_v9 = vpop.permute.xlu1 %372  ;;  %2592 = vrot.lane.b32.xlu0 %v2591_v32, %s2703_s18  ;;  %2587 = vrot.lane.b32.xlu1 %v2591_v32, %s2702_s8  ;;  %v649_v32 = vadd.f32 %v617_v11, %v420_v39 }
 0x125   :  { %v565_v59 = vpop.permute.xlu0 %564 }
 0x126   :  { %v2601_v46 = vpack.i.bf16 %v3566_v42, %v3565_v45  ;;  %v618_v4 = vmul.f32 %v2870_v55, %v565_v59  ;;  %v421_v45 = vmul.f32 %v2860_v53, %v368_v21  ;;  %v422_v42 = vmul.f32 %v2860_v53, %v373_v9 }
 0x128   :  { %v570_v51 = vpop.permute.xlu1 %569  ;;  %2602 = vrot.lane.b32.xlu0 %v2601_v46, %s2702_s8  ;;  %2597 = vrot.lane.b32.xlu1 %v2601_v46, %s2703_s18  ;;  %v650_v28 = vadd.f32 %v618_v4, %v421_v45 }
 0x129   :  { %v378_v47 = vpop.permute.xlu0 %377  ;;  %v619_v58 = vmul.f32 %v2870_v55, %v570_v51 }
 0x12a   :  { %v423_v11 = vmul.f32 %v2860_v53, %v378_v47 }
 0x12b   :  { %v651_v40 = vadd.f32 %v619_v58, %v422_v42 }
 0x12c   :  { %v789_v54 = vpop.permute.xlu1 %788 }
 0x12d   :  { %v846_v31 = vmul.f32 %v2881_v62, %v789_v54  ;;  %v575_v2 = vpop.permute.xlu0 %574 }
 0x12e   :  { %v620_v12 = vmul.f32 %v2870_v55, %v575_v2 }
 0x12f   :  { %v878_v34 = vadd.f32 %v846_v31, %v649_v32 }
 0x130   :  { %v799_v46 = vpop.permute.xlu1 %798  ;;  %v652_v31 = vadd.f32 %v620_v12, %v423_v11 }
 0x131   :  { %v848_v27 = vmul.f32 %v2881_v62, %v799_v46  ;;  %v794_v57 = vpop.permute.xlu0 %793  ;;  %v3178_v59 = vadd.f32 %v2910_v29, %v878_v34 }
 0x132   :  { %v847_v54 = vmul.f32 %v2881_v62, %v794_v57 }
 0x133   :  { %v880_v51 = vadd.f32 %v848_v27, %v651_v40  ;;  %v3571_v58 = vmax.f32 %v3178_v59, 0.0 }
 0x134   :  { %v879_v21 = vadd.f32 %v847_v54, %v650_v28  ;;  %v383_v39 = vpop.permute.xlu1 %382 }
 0x135   :  { %v804_v9 = vpop.permute.xlu0 %803  ;;  %v3186_v45 = vadd.f32 %v2910_v29, %v880_v51  ;;  %v424_v54 = vmul.f32 %v2860_v53, %v383_v39 }
 0x136   :  { %v3181_v32 = vadd.f32 %v2910_v29, %v879_v21  ;;  %v849_v4 = vmul.f32 %v2881_v62, %v804_v9 }
 0x137   :  { %v3573_v46 = vmax.f32 %v3186_v45, 0.0 }
 0x138   :  { %v3572_v42 = vmax.f32 %v3181_v32, 0.0  ;;  %v881_v47 = vadd.f32 %v849_v4, %v652_v31  ;;  %v580_v34 = vpop.permute.xlu1 %579 }
 0x139   :  { %v388_v2 = vpop.permute.xlu0 %387  ;;  %v621_v28 = vmul.f32 %v2870_v55, %v580_v34 }
 0x13a   :  { %v3190_v27 = vadd.f32 %v2910_v29, %v881_v47  ;;  %v2611_v12 = vpack.i.bf16 %v3572_v42, %v3571_v58  ;;  %v425_v9 = vmul.f32 %v2860_v53, %v388_v2 }
 0x13b   :  { %v653_v47 = vadd.f32 %v621_v28, %v424_v54 }
 0x13c   :  { %v3574_v57 = vmax.f32 %v3190_v27, 0.0  ;;  %v2478_v40 = vpop.permute.xlu1 %2477  ;;  %2612 = vrot.lane.b32.xlu0 %v2611_v12, %s2703_s18  ;;  %2607 = vrot.lane.b32.xlu1 %v2611_v12, %s2702_s8 }
 0x13d   :  { %v2480_v11 = vunpack.i.h.bf16 %v2478_v40  ;;  %v2479_v51 = vunpack.i.l.bf16 %v2478_v40  ;;  %v585_v21 = vpop.permute.xlu0 %584 }
 0x13e   :  { %v622_v31 = vmul.f32 %v2870_v55, %v585_v21  ;;  %v2621_v4 = vpack.i.bf16 %v3574_v57, %v3573_v46 }
 0x13f   :  { %v851_v34 = vmul.f32 %v2480_v11, %v2881_v62  ;;  %v850_v58 = vmul.f32 %v2479_v51, %v2881_v62 }
 0x140   :  { %v654_v12 = vadd.f32 %v622_v31, %v425_v9  ;;  %v2488_v42 = vpop.permute.xlu1 %2487  ;;  %2622 = vrot.lane.b32.xlu0 %v2621_v4, %s2702_s8  ;;  %2617 = vrot.lane.b32.xlu1 %v2621_v4, %s2703_s18 }
 0x141   :  { %v882_v39 = vadd.f32 %v850_v58, %v653_v47  ;;  %v2483_v53 = vpop.permute.xlu0 %2482  ;;  %v2490_v55 = vunpack.i.h.bf16 %v2488_v42  ;;  %v2489_v21 = vunpack.i.l.bf16 %v2488_v42 }
 0x142   :  { %v883_v2 = vadd.f32 %v851_v34, %v654_v12  ;;  %v2485_v46 = vunpack.i.h.bf16 %v2483_v53  ;;  %v2484_v28 = vunpack.i.l.bf16 %v2483_v53 }
 0x143   :  { %v921_v40 = vadd.f32 %v2910_v29, %v882_v39  ;;  %v1407_v58 = vsel %vm1403_vm0, %v924_v60, %v2490_v55  ;;  %v1406_v42 = vsel %vm1403_vm0, %v923_v5, %v2489_v21 }
 0x144   :  { %v922_v54 = vadd.f32 %v2910_v29, %v883_v2  ;;  %v2498_v62 = vpop.permute.xlu1 %2497  ;;  %v1405_v34 = vsel %vm1403_vm0, 0.0, %v2485_v46  ;;  %v1404_v29 = vsel %vm1403_vm0, 0.0, %v2484_v28 }
 0x145   :  { %v953_v11 = vmax.f32 %v921_v40, 0.0  ;;  %v2500_v51 = vunpack.i.h.bf16 %v2498_v62  ;;  %v2499_v9 = vunpack.i.l.bf16 %v2498_v62  ;;  %v2493_v31 = vpop.permute.xlu0 %2492 }
 0x146   :  { %v954_v57 = vmax.f32 %v922_v54, 0.0  ;;  %v2495_v4 = vunpack.i.h.bf16 %v2493_v31  ;;  %v2494_v47 = vunpack.i.l.bf16 %v2493_v31 }
 0x147   :  { %v1440_v12 = vsel %vm1436_vm1, %v1407_v58, %v2500_v51  ;;  %v1439_v39 = vsel %vm1436_vm1, %v1406_v42, %v2499_v9 }
 0x148   :  { %v2508_v53 = vpop.permute.xlu1 %2507  ;;  %v2631_v2 = vpack.i.bf16 %v954_v57, %v953_v11  ;;  %v1437_v37 = vsel %vm1436_vm1, %v1404_v29, %v2494_v47  ;;  %v1438_v60 = vsel %vm1436_vm1, %v1405_v34, %v2495_v4  ;;  %v1470_v46 = vpack.c.bf16 %v1440_v12, %v1439_v39 }
 0x149   :  { %v2503_v40 = vpop.permute.xlu0 %2502  ;;  %v2510_v55 = vunpack.i.h.bf16 %v2508_v53  ;;  %v2509_v44 = vunpack.i.l.bf16 %v2508_v53  ;;  %v1469_v5 = vpack.c.bf16 %v1438_v60, %v1437_v37 }
 0x14a   :  { %2632 = vrot.lane.b32.xlu0 %v2631_v2, %s2703_s18  ;;  %2627 = vrot.lane.b32.xlu1 %v2631_v2, %s2702_s8  ;;  %v2505_v21 = vunpack.i.h.bf16 %v2503_v40  ;;  %v2504_v28 = vunpack.i.l.bf16 %v2503_v40 }
 0x14b   :  { %2418 = vmatprep.mubr.msk.bf16.mxu0 %vm1516_vm2, %v1469_v5  ;;  %v1411_v51 = vsel %vm1403_vm0, %v928_v7, %v2510_v55  ;;  %v1410_v9 = vsel %vm1403_vm0, %v927_v13, %v2509_v44 }
 0x14c   :  { %v2518_v54 = vpop.permute.xlu1 %2517  ;;  %2419 = vmatmul.mubr.msk.bf16.vlgmr.msra.gmra.mrb[0].mxu0 %vm1516_vm2, %v1470_v46  ;;  %v1409_v4 = vsel %vm1403_vm0, %v926_v49, %v2505_v21  ;;  %v1408_v47 = vsel %vm1403_vm0, %v925_v52, %v2504_v28 }
 0x14d   :  { %v2520_v57 = vunpack.i.h.bf16 %v2518_v54  ;;  %v2519_v62 = vunpack.i.l.bf16 %v2518_v54  ;;  %v2513_v11 = vpop.permute.xlu0 %2512 }
 0x14e   :  { %v2515_v31 = vunpack.i.h.bf16 %v2513_v11  ;;  %v2514_v58 = vunpack.i.l.bf16 %v2513_v11  ;;  %2637 = vrot.lane.b32.xlu1 %v2701_v3, %s2703_s18 }
 0x14f   :  { %v1444_v50 = vsel %vm1436_vm1, %v1411_v51, %v2520_v57  ;;  %v1443_v7 = vsel %vm1436_vm1, %v1410_v9, %v2519_v62  ;;  %v3575_v51 = vmax.f32 %v3018_v1, 0.0 }
 0x150   :  { %v1441_v61 = vsel %vm1436_vm1, %v1408_v47, %v2514_v58  ;;  %v1442_v13 = vsel %vm1436_vm1, %v1409_v4, %v2515_v31  ;;  %v2528_v42 = vpop.permute.xlu1 %2527  ;;  %v1472_v12 = vpack.c.bf16 %v1444_v50, %v1443_v7 }
 0x151   :  { %v1471_v34 = vpack.c.bf16 %v1442_v13, %v1441_v61  ;;  %v2523_v29 = vpop.permute.xlu0 %2522  ;;  %v2530_v39 = vunpack.i.h.bf16 %v2528_v42  ;;  %v2529_v33 = vunpack.i.l.bf16 %v2528_v42  ;;  %v3576_v42 = vmax.f32 %v3030_v24, 0.0 }
 0x152   :  { %v2525_v53 = vunpack.i.h.bf16 %v2523_v29  ;;  %v2524_v49 = vunpack.i.l.bf16 %v2523_v29 }
 0x153   :  { %2422 = vmatprep.mubr.msk.bf16.mxu0 %vm1516_vm2, %v1471_v34  ;;  %v1415_v55 = vsel %vm1403_vm0, %v932_v26, %v2530_v39  ;;  %v1414_v44 = vsel %vm1403_vm0, %v931_v30, %v2529_v33 }
 0x154   :  { %v2538_v36 = vpop.permute.xlu1 %2537  ;;  %2423 = vmatmul.mubr.msk.bf16.gmra.mrb[4].mxu0 %vm1516_vm2, %v1472_v12  ;;  %v1413_v5 = vsel %vm1403_vm0, %v930_v18, %v2525_v53  ;;  %v1412_v46 = vsel %vm1403_vm0, %v929_v22, %v2524_v49 }
 0x155   :  { %v2540_v52 = vunpack.i.h.bf16 %v2538_v36  ;;  %v2539_v2 = vunpack.i.l.bf16 %v2538_v36  ;;  %v2533_v37 = vpop.permute.xlu0 %2532 }
 0x156   :  { %v2535_v40 = vunpack.i.h.bf16 %v2533_v37  ;;  %v2534_v60 = vunpack.i.l.bf16 %v2533_v37  ;;  %v3579_v37 = vmax.f32 %v3058_v8, 0.0 }
 0x157   :  { %v1448_v21 = vsel %vm1436_vm1, %v1415_v55, %v2540_v52  ;;  %v1447_v28 = vsel %vm1436_vm1, %v1414_v44, %v2539_v2 }
 0x158   :  { %v1445_v19 = vsel %vm1436_vm1, %v1412_v46, %v2534_v60  ;;  %v1446_v26 = vsel %vm1436_vm1, %v1413_v5, %v2535_v40  ;;  %v1474_v23 = vpack.c.bf16 %v1448_v21, %v1447_v28 }
 0x159   :  { %v1473_v54 = vpack.c.bf16 %v1446_v26, %v1445_v19  ;;  %v2543_v56 = vpop.permute.xlu0 %2542  ;;  %v3580_v26 = vmax.f32 %v3070_v41, 0.0 }
 0x15a   :  { %v2545_v18 = vunpack.i.h.bf16 %v2543_v56  ;;  %v2544_v30 = vunpack.i.l.bf16 %v2543_v56 }
 0x15b   :  { %2426 = vmatprep.mubr.msk.bf16.mxu0 %vm1516_vm2, %v1473_v54  ;;  %v3581_v54 = vmax.f32 %v3066_v35, 0.0  ;;  %v3582_v35 = vmax.f32 %v3101_v63, 0.0 }
 0x15c   :  { %2427 = vmatmul.mubr.msk.bf16.gmra.mrb[8].mxu0 %vm1516_vm2, %v1474_v23  ;;  %v1417_v11 = vsel %vm1403_vm0, %v934_v16, %v2545_v18  ;;  %v1416_v9 = vsel %vm1403_vm0, %v3575_v51, %v2544_v30  ;;  %v3577_v16 = vmax.f32 %v3026_v15, 0.0  ;;  %v3578_v15 = vmax.f32 %v3061_v25, 0.0 }
 0x166   :  { %v2548_v14 = vpop.permute.xlu1 %2547  ;;  %v2553_v57 = vpop.permute.xlu0 %2552 }
 0x167   :  { %v2555_v22 = vunpack.i.h.bf16 %v2553_v57  ;;  %v2554_v62 = vunpack.i.l.bf16 %v2553_v57  ;;  %v2550_v31 = vunpack.i.h.bf16 %v2548_v14  ;;  %v2549_v58 = vunpack.i.l.bf16 %v2548_v14 }
 0x169   :  { %v1449_v4 = vsel %vm1436_vm1, %v1416_v9, %v2554_v62  ;;  %v1450_v47 = vsel %vm1436_vm1, %v1417_v11, %v2555_v22  ;;  %v1419_v10 = vsel %vm1403_vm0, %v3576_v42, %v2550_v31  ;;  %v1418_v1 = vsel %vm1403_vm0, %v3577_v16, %v2549_v58 }
 0x16a   :  { %v1475_v50 = vpack.c.bf16 %v1450_v47, %v1449_v4  ;;  %v2558_v7 = vpop.permute.xlu1 %2557  ;;  %v2563_v39 = vpop.permute.xlu0 %2562  ;;  %v3583_v9 = vmax.f32 %v3098_v48, 0.0  ;;  %v3585_v16 = vmax.f32 %v3106_v0, 0.0  ;;  %v3586_v0 = vmax.f32 %v3141_v6, 0.0 }
 0x16b   :  { %v2560_v61 = vunpack.i.h.bf16 %v2558_v7  ;;  %v2559_v13 = vunpack.i.l.bf16 %v2558_v7  ;;  %v2565_v33 = vunpack.i.h.bf16 %v2563_v39  ;;  %v2564_v53 = vunpack.i.l.bf16 %v2563_v39 }
 0x16c   :  { %2430 = vmatprep.mubr.msk.bf16.mxu0 %vm1516_vm2, %v1475_v50 }
 0x16d   :  { %v1452_v34 = vsel %vm1436_vm1, %v1419_v10, %v2560_v61  ;;  %v1451_v29 = vsel %vm1436_vm1, %v1418_v1, %v2559_v13  ;;  %v1421_v2 = vsel %vm1403_vm0, %v3578_v15, %v2565_v33  ;;  %v1420_v40 = vsel %vm1403_vm0, %v3579_v37, %v2564_v53 }
 0x16e   :  { %v1476_v12 = vpack.c.bf16 %v1452_v34, %v1451_v29  ;;  %v3584_v10 = vmax.f32 %v3110_v20, 0.0 }
 0x170   :  { %2431 = vmatmul.mubr.msk.bf16.gmra.mrb[12].mxu0 %vm1516_vm2, %v1476_v12 }
 0x17e   :  { %v2568_v49 = vpop.permute.xlu1 %2567  ;;  %v2573_v24 = vpop.permute.xlu0 %2572 }
 0x17f   :  { %v2575_v36 = vunpack.i.h.bf16 %v2573_v24  ;;  %v2574_v52 = vunpack.i.l.bf16 %v2573_v24  ;;  %v2570_v60 = vunpack.i.h.bf16 %v2568_v49  ;;  %v2569_v55 = vunpack.i.l.bf16 %v2568_v49 }
 0x181   :  { %v1453_v44 = vsel %vm1436_vm1, %v1420_v40, %v2574_v52  ;;  %v1454_v5 = vsel %vm1436_vm1, %v1421_v2, %v2575_v36  ;;  %v1423_v25 = vsel %vm1403_vm0, %v3580_v26, %v2570_v60  ;;  %v1422_v8 = vsel %vm1403_vm0, %v3581_v54, %v2569_v55 }
 0x182   :  { %v1477_v46 = vpack.c.bf16 %v1454_v5, %v1453_v44  ;;  %v2578_v21 = vpop.permute.xlu1 %2577  ;;  %v2583_v30 = vpop.permute.xlu0 %2582  ;;  %v3587_v52 = vmax.f32 %v3138_v17, 0.0 }
 0x183   :  { %v2580_v28 = vunpack.i.h.bf16 %v2578_v21  ;;  %v2579_v19 = vunpack.i.l.bf16 %v2578_v21  ;;  %v2585_v14 = vunpack.i.h.bf16 %v2583_v30  ;;  %v2584_v57 = vunpack.i.l.bf16 %v2583_v30 }
 0x184   :  { %2434 = vmatprep.mubr.msk.bf16.mxu0 %vm1516_vm2, %v1477_v46  ;;  %v3588_v21 = vmax.f32 %v3150_v43, 0.0 }
 0x185   :  { %v1456_v23 = vsel %vm1436_vm1, %v1423_v25, %v2580_v28  ;;  %v1455_v56 = vsel %vm1436_vm1, %v1422_v8, %v2579_v19  ;;  %v1425_v51 = vsel %vm1403_vm0, %v3582_v35, %v2585_v14  ;;  %v1424_v31 = vsel %vm1403_vm0, %v3583_v9, %v2584_v57 }
 0x186   :  { %v1478_v18 = vpack.c.bf16 %v1456_v23, %v1455_v56  ;;  %v3589_v28 = vmax.f32 %v3146_v38, 0.0  ;;  %v3590_v38 = vmax.f32 %v3181_v32, 0.0  ;;  %v3591_v57 = vmax.f32 %v3178_v59, 0.0 }
 0x188   :  { %2435 = vmatmul.mubr.msk.bf16.gmra.mrb[16].mxu0 %vm1516_vm2, %v1478_v18 }
 0x196   :  { %v2588_v22 = vpop.permute.xlu1 %2587  ;;  %v2593_v41 = vpop.permute.xlu0 %2592 }
 0x197   :  { %v2595_v62 = vunpack.i.h.bf16 %v2593_v41  ;;  %v2594_v11 = vunpack.i.l.bf16 %v2593_v41  ;;  %v2590_v58 = vunpack.i.h.bf16 %v2588_v22  ;;  %v2589_v4 = vunpack.i.l.bf16 %v2588_v22 }
 0x199   :  { %v1457_v47 = vsel %vm1436_vm1, %v1424_v31, %v2594_v11  ;;  %v1458_v50 = vsel %vm1436_vm1, %v1425_v51, %v2595_v62  ;;  %v1427_v63 = vsel %vm1403_vm0, %v3584_v10, %v2590_v58  ;;  %v1426_v48 = vsel %vm1403_vm0, %v3585_v16, %v2589_v4 }
 0x19a   :  { %v1479_v7 = vpack.c.bf16 %v1458_v50, %v1457_v47  ;;  %v2598_v61 = vpop.permute.xlu1 %2597  ;;  %v2603_v12 = vpop.permute.xlu0 %2602  ;;  %v3592_v4 = vmax.f32 %v3190_v27, 0.0  ;;  %v3593_v47 = vmax.f32 %v3186_v45, 0.0 }
 0x19b   :  { %v2600_v13 = vunpack.i.h.bf16 %v2598_v61  ;;  %v2599_v42 = vunpack.i.l.bf16 %v2598_v61  ;;  %v2605_v39 = vunpack.i.h.bf16 %v2603_v12  ;;  %v2604_v33 = vunpack.i.l.bf16 %v2603_v12  ;;  %v2644_v12 = vld [vmem:[%s3551_s5 + $0x40] sm:$0xff]  }
 0x19c   :  { %2438 = vmatprep.mubr.msk.bf16.mxu0 %vm1516_vm2, %v1479_v7  ;;  %2365 = vmatprep.subr.bf16.mxu1 %v2644_v12 }
 0x19d   :  { %v1460_v1 = vsel %vm1436_vm1, %v1427_v63, %v2600_v13  ;;  %v1459_v34 = vsel %vm1436_vm1, %v1426_v48, %v2599_v42  ;;  %v1429_v36 = vsel %vm1403_vm0, %v3586_v0, %v2605_v39  ;;  %v1428_v15 = vsel %vm1403_vm0, %v3587_v52, %v2604_v33  ;;  %v3361_v13 = vld [vmem:[%s3550_s4] ss:$0 sm:$0xff]  ;;  %v2646_v0 = vld [vmem:[%s3551_s5 + $0x48] sm:$0xff]  }
 0x19e   :  { %v1480_v29 = vpack.c.bf16 %v1460_v1, %v1459_v34  ;;  %v2645_v39 = vld [vmem:[%s3551_s5] sm:$0xff]  }
 0x19f   :  { %2366 = vmatpush3.bf16.msra.mxu1 %v2645_v39 }
 0x1a0   :  { %2439 = vmatmul.mubr.msk.bf16.gmra.mrb[20].mxu0 %vm1516_vm2, %v1480_v29  ;;  %2367 = vmatprep.subr.bf16.mxu1 %v2646_v0 }
 0x1ae   :  { %v2608_v53 = vpop.permute.xlu1 %2607  ;;  %v2613_v20 = vpop.permute.xlu0 %2612 }
 0x1af   :  { %v2615_v49 = vunpack.i.h.bf16 %v2613_v20  ;;  %v2614_v24 = vunpack.i.l.bf16 %v2613_v20  ;;  %v2610_v2 = vunpack.i.h.bf16 %v2608_v53  ;;  %v2609_v37 = vunpack.i.l.bf16 %v2608_v53 }
 0x1b1   :  { %v1461_v40 = vsel %vm1436_vm1, %v1428_v15, %v2614_v24  ;;  %v1462_v60 = vsel %vm1436_vm1, %v1429_v36, %v2615_v49  ;;  %v1431_v6 = vsel %vm1403_vm0, %v3588_v21, %v2610_v2  ;;  %v1430_v17 = vsel %vm1403_vm0, %v3589_v28, %v2609_v37  ;;  %v2647_v37 = vld [vmem:[%s3551_s5 + $0x8] sm:$0xff]  }
 0x1b2   :  { %v1481_v55 = vpack.c.bf16 %v1462_v60, %v1461_v40  ;;  %v2618_v44 = vpop.permute.xlu1 %2617  ;;  %v2623_v54 = vpop.permute.xlu0 %2622  ;;  %2368 = vmatpush3.bf16.msra.mxu1 %v2647_v37 }
 0x1b3   :  { %v2620_v5 = vunpack.i.h.bf16 %v2618_v44  ;;  %v2619_v46 = vunpack.i.l.bf16 %v2618_v44  ;;  %v2625_v8 = vunpack.i.h.bf16 %v2623_v54  ;;  %v2624_v23 = vunpack.i.l.bf16 %v2623_v54  ;;  %v2648_v44 = vld [vmem:[%s3551_s5 + $0x50] sm:$0xff]   ;;  %v2651_v54 = vld [vmem:[%s3551_s5 + $0x18] sm:$0xff]  }
 0x1b4   :  { %2442 = vmatprep.mubr.msk.bf16.mxu0 %vm1516_vm2, %v1481_v55  ;;  %2369 = vmatprep.subr.bf16.mxu1 %v2648_v44 }
 0x1b5   :  { %v1464_v19 = vsel %vm1436_vm1, %v1431_v6, %v2620_v5  ;;  %v1463_v26 = vsel %vm1436_vm1, %v1430_v17, %v2619_v46  ;;  %v1433_v14 = vsel %vm1403_vm0, %v3590_v38, %v2625_v8  ;;  %v1432_v22 = vsel %vm1403_vm0, %v3591_v57, %v2624_v23  ;;  %v2649_v5 = vld [vmem:[%s3551_s5 + $0x10] sm:$0xff]   ;;  %v2650_v6 = vld [vmem:[%s3551_s5 + $0x58] sm:$0xff]   ;;  %v2653_v57 = vld [vmem:[%s3551_s5 + $0x20] sm:$0xff]  }
 0x1b6   :  { %v1482_v25 = vpack.c.bf16 %v1464_v19, %v1463_v26  ;;  %2370 = vmatpush3.bf16.msra.mxu1 %v2649_v5 }
 0x1b7   :  { %2371 = vmatprep.subr.bf16.mxu1 %v2650_v6 }
 0x1b8   :  { %2443 = vmatmul.mubr.msk.bf16.gmra.mrb[24].mxu0 %vm1516_vm2, %v1482_v25 }
 0x1ba   :  { %2372 = vmatpush3.bf16.msra.mxu1 %v2651_v54 }
 0x1bc   :  { %v2628_v56 = vpop.permute.xlu1 %2627  ;;  %v2633_v43 = vpop.permute.xlu0 %2632 }
 0x1bd   :  { %v2635_v18 = vunpack.i.h.bf16 %v2633_v43  ;;  %v2634_v30 = vunpack.i.l.bf16 %v2633_v43  ;;  %v2630_v41 = vunpack.i.h.bf16 %v2628_v56  ;;  %v2629_v62 = vunpack.i.l.bf16 %v2628_v56  ;;  %v2652_v56 = vld [vmem:[%s3551_s5 + $0x60] sm:$0xff]  }
 0x1be   :  { %2373 = vmatprep.subr.bf16.mxu1 %v2652_v56 }
 0x1bf   :  { %v1465_v11 = vsel %vm1436_vm1, %v1432_v22, %v2634_v30  ;;  %v1466_v35 = vsel %vm1436_vm1, %v1433_v14, %v2635_v18  ;;  %v1435_v32 = vsel %vm1403_vm0, %v3592_v4, %v2630_v41  ;;  %v1434_v59 = vsel %vm1403_vm0, %v3593_v47, %v2629_v62  ;;  %v2654_v62 = vld [vmem:[%s3551_s5 + $0x68] sm:$0xff]   ;;  %2374 = vmatpush3.bf16.msra.mxu1 %v2653_v57  ;;  %v2657_v4 = vld [vmem:[%s3551_s5 + $0x30] sm:$0xff]   ;;  %v2659_v47 = vld [vmem:[%s3551_s5 + $0x38] sm:$0xff]  }
 0x1c0   :  { %v1483_v51 = vpack.c.bf16 %v1466_v35, %v1465_v11  ;;  %v2638_v9 = vpop.permute.xlu1 %2637  ;;  %2375 = vmatprep.subr.bf16.mxu1 %v2654_v62 }
 0x1c1   :  { %v2640_v31 = vunpack.i.h.bf16 %v2638_v9  ;;  %v2639_v58 = vunpack.i.l.bf16 %v2638_v9 }
 0x1c2   :  { %2446 = vmatprep.mubr.msk.bf16.mxu0 %vm1516_vm2, %v1483_v51 }
 0x1c3   :  { %v1467_v50 = vsel %vm1436_vm1, %v1434_v59, %v2639_v58  ;;  %v1468_v7 = vsel %vm1436_vm1, %v1435_v32, %v2640_v31  ;;  %v2655_v31 = vld [vmem:[%s3551_s5 + $0x28] sm:$0xff]   ;;  %v2656_v58 = vld [vmem:[%s3551_s5 + $0x70] sm:$0xff]   ;;  %v2658_v32 = vld [vmem:[%s3551_s5 + $0x78] sm:$0xff]  }
 0x1c4   :  { %v1484_v61 = vpack.c.bf16 %v1468_v7, %v1467_v50  ;;  %2376 = vmatpush3.bf16.msra.mxu1 %v2655_v31 }
 0x1c5   :  { %2377 = vmatprep.subr.bf16.mxu1 %v2656_v58 }
 0x1c6   :  { %2447 = vmatmul.mubr.msk.bf16.gmra.mrb[28].mxu0 %vm1516_vm2, %v1484_v61 }
 0x1c8   :  { %2378 = vmatpush3.bf16.msra.mxu1 %v2657_v4 }
 0x1c9   :  { %2379 = vmatprep.subr.bf16.mxu1 %v2658_v32 }
 0x1cc   :  { %2380 = vmatpush3.bf16.msra.mxu1 %v2659_v47 }
 0x21f   :  { %v2420_v27 = vpop.f32.mrb[0].mxu0 }
 0x220   :  { %v1608_v42 = vadd.f32 %v2420_v27, %v3361_v13  ;;  %v1599_v45 = vpop.f32.mrb[1].mxu0 }
 0x221   :  { %v1600_v10 = vadd.f32 %v3361_v13, %v1599_v45  ;;  %v2421_v63 = vpop.f32.mrb[2].mxu0 }
 0x222   :  { %v1611_v16 = vadd.f32 %v2421_v63, %v3361_v13  ;;  %v1602_v48 = vpop.f32.mrb[3].mxu0  ;;  %v1728_v34 = vmax.f32 %v1608_v42, 0.0 }
 0x223   :  { %v1603_v1 = vadd.f32 %v3361_v13, %v1602_v48  ;;  %v1726_v33 = vmax.f32 %v1600_v10, 0.0 }
 0x224   :  { %v1729_v29 = vmax.f32 %v1611_v16, 0.0 }
 0x225   :  { %v1727_v53 = vmax.f32 %v1603_v1, 0.0 }
 0x226   :  { %v1759_v20 = vpack.c.bf16 %v1729_v29, %v1728_v34 }
 0x227   :  { %v3373_v49 = vpack.c.bf16 %v1727_v53, %v1726_v33  ;;  %v2424_v24 = vpop.f32.mrb[4].mxu0 }
 0x228   :  { %v1624_v36 = vadd.f32 %v2424_v24, %v3361_v13  ;;  %1775 = vrot.lane.b32.xlu1 %v1759_v20, %s2703_s18  ;;  %v1615_v52 = vpop.f32.mrb[5].mxu0 }
 0x229   :  { %v1616_v15 = vadd.f32 %v3361_v13, %v1615_v52  ;;  %v2425_v2 = vpop.f32.mrb[6].mxu0 }
 0x22a   :  { %v1627_v40 = vadd.f32 %v2425_v2, %v3361_v13  ;;  %v1618_v60 = vpop.f32.mrb[7].mxu0  ;;  %v1732_v46 = vmax.f32 %v1624_v36, 0.0 }
 0x22b   :  { %v1619_v55 = vadd.f32 %v3361_v13, %v1618_v60  ;;  %v1730_v28 = vmax.f32 %v1616_v15, 0.0 }
 0x22c   :  { %v1733_v21 = vmax.f32 %v1627_v40, 0.0 }
 0x22d   :  { %v1731_v17 = vmax.f32 %v1619_v55, 0.0 }
 0x22e   :  { %v1761_v19 = vpack.c.bf16 %v1733_v21, %v1732_v46  ;;  %v2660_v46 = vld [vmem:[%s3551_s5 + $0xc0] sm:$0xff]  }
 0x22f   :  { %v1760_v26 = vpack.c.bf16 %v1731_v17, %v1730_v28  ;;  %v2428_v25 = vpop.f32.mrb[8].mxu0  ;;  %2387 = vmatprep.subr.bf16.mxu1 %v2660_v46  ;;  %v2670_v46 = vld [vmem:[%s3551_s5 + $0xe8] sm:$0xff]  }
 0x230   :  { %v1640_v8 = vadd.f32 %v2428_v25, %v3361_v13  ;;  %v1631_v23 = vpop.f32.mrb[9].mxu0 }
 0x231   :  { %v1632_v43 = vadd.f32 %v3361_v13, %v1631_v23  ;;  %v2429_v18 = vpop.f32.mrb[10].mxu0  ;;  %1778 = vrot.lane.b32.xlu1 %v1760_v26, %s2704_s2 }
 0x232   :  { %v1643_v30 = vadd.f32 %v2429_v18, %v3361_v13  ;;  %v1634_v38 = vpop.f32.mrb[11].mxu0  ;;  %v1736_v22 = vmax.f32 %v1640_v8, 0.0 }
 0x233   :  { %v1635_v14 = vadd.f32 %v3361_v13, %v1634_v38  ;;  %v1734_v11 = vmax.f32 %v1632_v43, 0.0 }
 0x234   :  { %v1737_v41 = vmax.f32 %v1643_v30, 0.0 }
 0x235   :  { %v1735_v35 = vmax.f32 %v1635_v14, 0.0  ;;  %1781 = vrot.lane.b32.xlu1 %v1761_v19, %s2705_s20 }
 0x236   :  { %v1763_v51 = vpack.c.bf16 %v1737_v41, %v1736_v22 }
 0x237   :  { %v3413_v9 = vpack.c.bf16 %v1735_v35, %v1734_v11 }
 0x238   :  { %1784 = vrot.lane.b32.xlu0 %v1763_v51, %s2703_s18 }
 0x243   :  { %v2432_v59 = vpop.f32.mrb[12].mxu0 }
 0x244   :  { %v1656_v50 = vadd.f32 %v2432_v59, %v3361_v13  ;;  %v1647_v7 = vpop.f32.mrb[13].mxu0 }
 0x245   :  { %v1648_v61 = vadd.f32 %v3361_v13, %v1647_v7  ;;  %v2433_v27 = vpop.f32.mrb[14].mxu0 }
 0x246   :  { %v1659_v42 = vadd.f32 %v2433_v27, %v3361_v13  ;;  %v1650_v45 = vpop.f32.mrb[15].mxu0  ;;  %v1740_v63 = vmax.f32 %v1656_v50, 0.0 }
 0x247   :  { %v1651_v10 = vadd.f32 %v3361_v13, %v1650_v45  ;;  %v1738_v48 = vmax.f32 %v1648_v61, 0.0 }
 0x248   :  { %v1741_v16 = vmax.f32 %v1659_v42, 0.0 }
 0x249   :  { %v1739_v1 = vmax.f32 %v1651_v10, 0.0 }
 0x24a   :  { %v1765_v34 = vpack.c.bf16 %v1741_v16, %v1740_v63 }
 0x24b   :  { %v1764_v29 = vpack.c.bf16 %v1739_v1, %v1738_v48  ;;  %v2262_v1 = vld [vmem:[#allocation2] sm:$0x1] }
 0x24d   :  { %1787 = vrot.lane.b32.xlu0 %v1764_v29, %s2704_s2 }
 0x251   :  { %1790 = vrot.lane.b32.xlu0 %v1765_v34, %s2705_s20 }
 0x25b   :  { %v2436_v12 = vpop.f32.mrb[16].mxu0 }
 0x25c   :  { %v1672_v39 = vadd.f32 %v2436_v12, %v3361_v13  ;;  %v1663_v33 = vpop.f32.mrb[17].mxu0 }
 0x25d   :  { %v1664_v53 = vadd.f32 %v3361_v13, %v1663_v33  ;;  %v2437_v20 = vpop.f32.mrb[18].mxu0 }
 0x25e   :  { %v1675_v24 = vadd.f32 %v2437_v20, %v3361_v13  ;;  %v1666_v0 = vpop.f32.mrb[19].mxu0  ;;  %v1744_v52 = vmax.f32 %v1672_v39, 0.0 }
 0x25f   :  { %v1667_v36 = vadd.f32 %v3361_v13, %v1666_v0  ;;  %v1742_v2 = vmax.f32 %v1664_v53, 0.0  ;;  %v2661_v0 = vld [vmem:[%s3551_s5 + $0x80] sm:$0xff]  }
 0x260   :  { %v1745_v15 = vmax.f32 %v1675_v24, 0.0 }
 0x261   :  { %v1743_v37 = vmax.f32 %v1667_v36, 0.0 }
 0x262   :  { %v1767_v40 = vpack.c.bf16 %v1745_v15, %v1744_v52  ;;  %v2662_v15 = vld [vmem:[%s3551_s5 + $0xc8] sm:$0xff]  }
 0x263   :  { %v3441_v60 = vpack.c.bf16 %v1743_v37, %v1742_v2  ;;  %v2664_v2 = vld [vmem:[%s3551_s5 + $0xd0] sm:$0xff]  }
 0x264   :  { %1793 = vrot.lane.b32.xlu1 %v1767_v40, %s2703_s18  ;;  %v2665_v37 = vld [vmem:[%s3551_s5 + $0x90] sm:$0xff]   ;;  %v2666_v40 = vld [vmem:[%s3551_s5 + $0xd8] sm:$0xff]  }
 0x273   :  { %v2440_v55 = vpop.f32.mrb[20].mxu0 }
 0x274   :  { %v1688_v44 = vadd.f32 %v2440_v55, %v3361_v13  ;;  %v1679_v5 = vpop.f32.mrb[21].mxu0  ;;  %v2667_v55 = vld [vmem:[%s3551_s5 + $0x98] sm:$0xff]  }
 0x275   :  { %v1680_v21 = vadd.f32 %v3361_v13, %v1679_v5  ;;  %v2441_v6 = vpop.f32.mrb[22].mxu0  ;;  %v2669_v5 = vld [vmem:[%s3551_s5 + $0xa0] sm:$0xff]  }
 0x276   :  { %v1691_v28 = vadd.f32 %v2441_v6, %v3361_v13  ;;  %v1682_v17 = vpop.f32.mrb[23].mxu0  ;;  %v1748_v26 = vmax.f32 %v1688_v44, 0.0  ;;  %v2668_v44 = vld [vmem:[%s3551_s5 + $0xe0] sm:$0xff]   ;;  %v2672_v6 = vld [vmem:[%s3551_s5 + $0xf0] sm:$0xff]  }
 0x277   :  { %v1683_v19 = vadd.f32 %v3361_v13, %v1682_v17  ;;  %v1746_v54 = vmax.f32 %v1680_v21, 0.0  ;;  %v2671_v21 = vld [vmem:[%s3551_s5 + $0xa8] sm:$0xff]   ;;  %v2674_v17 = vld [vmem:[%s3551_s5 + $0xf8] sm:$0xff]  }
 0x278   :  { %v1749_v25 = vmax.f32 %v1691_v28, 0.0  ;;  %v2673_v28 = vld [vmem:[%s3551_s5 + $0xb0] sm:$0xff]  }
 0x279   :  { %v1747_v8 = vmax.f32 %v1683_v19, 0.0  ;;  %v2675_v19 = vld [vmem:[%s3551_s5 + $0xb8] sm:$0xff]  }
 0x27a   :  { %v1769_v23 = vpack.c.bf16 %v1749_v25, %v1748_v26 }
 0x27b   :  { %v1768_v56 = vpack.c.bf16 %v1747_v8, %v1746_v54 }
 0x27d   :  { %1796 = vrot.lane.b32.xlu1 %v1768_v56, %s2704_s2 }
 0x281   :  { %1799 = vrot.lane.b32.xlu1 %v1769_v23, %s2705_s20 }
 0x28b   :  { %v2444_v43 = vpop.f32.mrb[24].mxu0 }
 0x28c   :  { %v1704_v18 = vadd.f32 %v2444_v43, %v3361_v13  ;;  %v1695_v30 = vpop.f32.mrb[25].mxu0 }
 0x28d   :  { %v1696_v38 = vadd.f32 %v3361_v13, %v1695_v30  ;;  %v2445_v14 = vpop.f32.mrb[26].mxu0 }
 0x28e   :  { %v1707_v57 = vadd.f32 %v2445_v14, %v3361_v13  ;;  %v1698_v22 = vpop.f32.mrb[27].mxu0  ;;  %v1752_v62 = vmax.f32 %v1704_v18, 0.0 }
 0x28f   :  { %v1699_v41 = vadd.f32 %v3361_v13, %v1698_v22  ;;  %v1750_v35 = vmax.f32 %v1696_v38, 0.0  ;;  %v2706_v22 = vmov 0.0|0.0  }
 0x290   :  { %v1753_v11 = vmax.f32 %v1707_v57, 0.0 }
 0x291   :  { %v1751_v51 = vmax.f32 %v1699_v41, 0.0 }
 0x292   :  { %v1771_v31 = vpack.c.bf16 %v1753_v11, %v1752_v62 }
 0x293   :  { %v3457_v58 = vpack.c.bf16 %v1751_v51, %v1750_v35 }
 0x294   :  { %1802 = vrot.lane.b32.xlu0 %v1771_v31, %s2703_s18  ;;  %v2313_v31 = vld [vmem:[%s3552_s6] ss:$0 sm:$0xff]  ;;  %s2708_s6 = smov [#allocation3]  }
 0x295   :  { %s2281_s14 = sshll.u32 %s2708_s6, 4  ;;  %s2282_s14 = int_to_ptr.vmem [resolvable:$true] %s2281_s14 }
 0x296   :  { %s2676_s15 = scalar_lea.vmem %s2282_s14, 16  ;;  %s2680_s0 = scalar_lea.vmem %s2282_s14, 32 }
 0x297   :  { %p2677_p0 = scmp.ne.s32.totalorder %s2282_s14, %s2676_s15  ;;  %p2681_p1 = scmp.lt.s32.totalorder %s2282_s14, %s2282_s14 }
 0x298   :  { %p2682_p2 = scmp.lt.s32.totalorder %s2680_s0, %s2676_s15 }
 0x299   :  { %v2448_v4 = vpop.f32.mrb[28].mxu0 }
 0x29a   :  { %v1720_v32 = vadd.f32 %v2448_v4, %v3361_v13  ;;  %v1711_v47 = vpop.f32.mrb[29].mxu0  ;;  %v1776_v34 = vpop.permute.xlu1 %1775  ;;  %p2683_p3 = por %p2682_p2, %p2681_p1 }
 0x29b   :  { %v1712_v59 = vadd.f32 %v3361_v13, %v1711_v47  ;;  %v2449_v50 = vpop.f32.mrb[30].mxu0  ;;  %v1812_v53 = vsel %vm1436_vm1, %v3373_v49, %v1776_v34  ;;  %v2663_v49 = vld [vmem:[%s3551_s5 + $0x88] sm:$0xff]  }
 0x29c   :  { %v1723_v7 = vadd.f32 %v2449_v50, %v3361_v13  ;;  %v1714_v61 = vpop.f32.mrb[31].mxu0  ;;  %v1756_v42 = vmax.f32 %v1720_v32, 0.0  ;;  %p2684_p4 = pnand %p2683_p3, %p2677_p0 }
 0x29d   :  { %v1715_v27 = vadd.f32 %v3361_v13, %v1714_v61  ;;  %v1754_v10 = vmax.f32 %v1712_v59, 0.0 }
 0x29e   :  { %v1757_v45 = vmax.f32 %v1723_v7, 0.0 }
 0x29f   :  { %v1755_v63 = vmax.f32 %v1715_v27, 0.0 }
 0x2a0   :  { %v1773_v16 = vpack.c.bf16 %v1757_v45, %v1756_v42 }
 0x2a1   :  { %v1772_v48 = vpack.c.bf16 %v1755_v63, %v1754_v10  ;;  %v2191_v63 = vld [vmem:[%s3553_s7] sm:$0xff] }
 0x2a3   :  { %1805 = vrot.lane.b32.xlu0 %v1772_v48, %s2704_s2  ;;  %v1779_v12 = vpop.permute.xlu1 %1778 }
 0x2a4   :  { %v1815_v36 = vsel %vm1813_vm3, %v1812_v53, %v1779_v12 }
 0x2a7   :  { %1808 = vrot.lane.b32.xlu0 %v1773_v16, %s2705_s20  ;;  %v1782_v33 = vpop.permute.xlu1 %1781  ;;  %v2268_v16 = vlaneseq }
 0x2a9   :  { %v2269_v48 = vshrl.u32 %v2268_v16, 7 }
 0x2aa   :  { %v1785_v29 = vpop.permute.xlu0 %1784 }
 0x2ab   :  { %2265 = vperm.xlu0 %2469, %v2262_v1   ;;  %v1822_v13 = vsel %vm1436_vm1, %v3413_v9, %v1785_v29  ;;  %v1818_v9 = vsel %vm1816_vm4, %v1815_v36, %v1782_v33  ;;  %v2270_v1 = vsub.s32 0, %v2269_v48 }
 0x2bf   :  { %v1788_v39 = vpop.permute.xlu0 %1787 }
 0x2c0   :  { %v1824_v20 = vsel %vm1813_vm3, %v1822_v13, %v1788_v39 }
 0x2c3   :  { %v1791_v24 = vpop.permute.xlu0 %1790 }
 0x2c4   :  { %v1826_v52 = vsel %vm1816_vm4, %v1824_v20, %v1791_v24 }
 0x2c5   :  { %2139 = vmatprep.mubr.bf16.mxu1 %v1826_v52 }
 0x2c6   :  { %2140 = vmatmul.mubr.bf16.vlgmr.msra.gmra.mrb[0].mxu1 %v1818_v9 }
 0x2c7   :  { %2388 = vmatpush3.bf16.msra.mxu1 %v2661_v0 }
 0x2c8   :  { %2389 = vmatprep.subr.bf16.mxu1 %v2662_v15 }
 0x2cb   :  { %2390 = vmatpush3.bf16.msra.mxu1 %v2663_v49 }
 0x2cc   :  { %2391 = vmatprep.subr.bf16.mxu1 %v2664_v2 }
 0x2cf   :  { %2392 = vmatpush3.bf16.msra.mxu1 %v2665_v37 }
 0x2d0   :  { %2393 = vmatprep.subr.bf16.mxu1 %v2666_v40 }
 0x2d3   :  { %2394 = vmatpush3.bf16.msra.mxu1 %v2667_v55 }
 0x2d4   :  { %2395 = vmatprep.subr.bf16.mxu1 %v2668_v44 }
 0x2d6   :  { %v1794_v26 = vpop.permute.xlu1 %1793 }
 0x2d7   :  { %2396 = vmatpush3.bf16.msra.mxu1 %v2669_v5  ;;  %v1830_v43 = vsel %vm1436_vm1, %v3441_v60, %v1794_v26 }
 0x2d8   :  { %2397 = vmatprep.subr.bf16.mxu1 %v2670_v46 }
 0x2db   :  { %2398 = vmatpush3.bf16.msra.mxu1 %v2671_v21 }
 0x2dc   :  { %2399 = vmatprep.subr.bf16.mxu1 %v2672_v6 }
 0x2df   :  { %2400 = vmatpush3.bf16.msra.mxu1 %v2673_v28 }
 0x2e0   :  { %2401 = vmatprep.subr.bf16.mxu1 %v2674_v17 }
 0x2e3   :  { %2402 = vmatpush3.bf16.msra.mxu1 %v2675_v19 }
 0x2e4   :  { %2457 = vmatprep.subr.bf16.mxu1 %v2706_v22 }
 0x2ef   :  { %v1797_v54 = vpop.permute.xlu1 %1796 }
 0x2f0   :  { %v1832_v38 = vsel %vm1813_vm3, %v1830_v43, %v1797_v54 }
 0x2f3   :  { %v1800_v23 = vpop.permute.xlu1 %1799 }
 0x2f4   :  { %v1834_v57 = vsel %vm1816_vm4, %v1832_v38, %v1800_v23 }
 0x306   :  { %v1803_v25 = vpop.permute.xlu0 %1802 }
 0x307   :  { %v1838_v56 = vsel %vm1436_vm1, %v3457_v58, %v1803_v25 }
 0x315   :  { %v1806_v8 = vpop.permute.xlu0 %1805 }
 0x316   :  { %v1840_v18 = vsel %vm1813_vm3, %v1838_v56, %v1806_v8 }
 0x319   :  { %v1809_v30 = vpop.permute.xlu0 %1808 }
 0x31a   :  { %v1842_v14 = vsel %vm1816_vm4, %v1840_v18, %v1809_v30 }
 0x31b   :  { %2180 = vmatprep.mubr.bf16.mxu1 %v1842_v14 }
 0x31c   :  { %2181 = vmatmul.mubr.bf16.vlgmr.msra.gmra.mrb[4].mxu1 %v1834_v57 }
 0x31d   :  { %2454 = vmatprep.mubr.msk.f32.mxu1 %vm2707_vm5, %v2701_v3 }
 0x32a   :  { %v2266_v34 = vpop.permute.xlu0 %2265 }
 0x32b   :  { %v2271_v29 = vrot.slane %v2266_v34, %v2270_v1 }
 0x399   :  { %v2381_v41 = vpop.f32.mrb[0].mxu1 }
 0x39a   :  { %v2382_v62 = vpop.f32.mrb[1].mxu1 }
 0x39b   :  { %v2383_v11 = vadd.f32 %v2382_v62, %v2381_v41  ;;  %v2384_v60 = vpop.f32.mrb[2].mxu1 }
 0x39c   :  { %v2385_v35 = vpop.f32.mrb[3].mxu1 }
 0x39d   :  { %v2386_v51 = vadd.f32 %v2385_v35, %v2384_v60  ;;  %v2142_v32 = vadd.f32 %v2383_v11, %v2313_v31 }
 0x39f   :  { %v2145_v7 = vadd.f32 %v2386_v51, %v2313_v31 }
 0x3ef   :  { %v2403_v58 = vpop.f32.mrb[4].mxu1 }
 0x3f0   :  { %v2404_v4 = vpop.f32.mrb[5].mxu1 }
 0x3f1   :  { %v2405_v47 = vadd.f32 %v2404_v4, %v2403_v58  ;;  %v2406_v59 = vpop.f32.mrb[6].mxu1 }
 0x3f2   :  { %v2407_v50 = vpop.f32.mrb[7].mxu1 }
 0x3f3   :  { %v2183_v61 = vadd.f32 %v2405_v47, %v2142_v32  ;;  %v2408_v27 = vadd.f32 %v2407_v50, %v2406_v59 }
 0x3f5   :  { %v2186_v3 = vadd.f32 %v2408_v27, %v2145_v7  ;;  %v2189_v42 = vmax.f32 %v2183_v61, 0.0 }
 0x3f7   :  { %v2190_v45 = vmax.f32 %v2186_v3, 0.0 }
 0x3f9   :  { %v2458_v10 = vpack.c.bf16 %v2190_v45, %v2189_v42 }
 0x3fb   :  { %2459 = vmatpush3.bf16.xpose.msra.mxu1 %v2458_v10 }
 0x402   :  { %2455 = vmatmul.mubr.f32.vlgmr.msra.gmra.mrb[8].mxu1 %v2191_v63 }
 0x4d5   :  { %v2258_v12 = vpop.f32.mrb[8].mxu1 }
 0x4d6   :  { %v2272_v39 = vadd.f32 %v2271_v29, %v2258_v12  ;;  %v2456_v33 = vpop.f32.mrb[9].mxu1 }
 0x4d8   :  { %2274 = vst.msk [vmem:[#allocation3] sm:$0x1] %vm2273_vm6, %v2272_v39 }
 0x4d9   :  { %2687 = shalt.err (!%p2684_p4)
}
 0x4da   :  { %s2688_s8 = scalar_lea.hbm %s3555_s9, 16 }
 0x4db   :  { %p2689_p5 = scmp.ne.s32.totalorder %s3555_s9, %s2688_s8  ;;  %p2692_p6 = scmp.lt.u32.totalorder %s2688_s8, %s3555_s9 }
 0x4dd   :  { %p2694_p7 = pnand %p2692_p6, %p2689_p5 }
 0x4df   :  { %2697 = shalt.err (!%p2694_p7)
}
 0x4e0   :  { %2284 = dma.vmem_to_hbm [thread:$0]  %s2282_s14, 16, %s3555_s9, [#allocation4]  }
 0x4e1   :  { %2698 = dma.done.wait [#allocation4], 16  }
 0x4e2   :  { %2699 = vsyncadd [#allocation4], 4294967280 }
 0x4e3   :  { %2288 = vsyncpa [#allocation4], 1 }

</bundles_post_ra>
